<compile_context>
chip_gen: v5e
topology: v5e:2x2
jax: 0.10.0
libtpu: 0.0.40
codegen_flags: <defaults>
</compile_context>

<pallas_src>
import functools

import jax
import jax.numpy as jnp
from jax import lax
from jax.experimental import pallas as pl
from jax.experimental.pallas import tpu as pltpu


def _round_up(x, m):
    return ((x + m - 1) // m) * m


def _vmem_limit_bytes():
    # Per-generation scoped-VMEM limit (64 MiB == full v7x VMEM -> no headroom there).
    try:
        cap = getattr(pltpu.get_tpu_info(), "vmem_capacity_bytes", None)
        if cap:
            return int(min(cap * 3 // 4, 96 * 1024 * 1024))
    except Exception:
        pass
    return 48 * 1024 * 1024


# ----------------------------------------------------------------------------
# Pallas kernel: one R-GCN layer.
# grid = (dst-node tiles, contraction tiles over the flattened (relation, src) axis)
# ----------------------------------------------------------------------------
def rgcn_layer_kernel(mask_ref, bi_ref, bk_ref, adj_ref, ht_ref, *refs,
                      use_self_loop, num_k_blocks):
    if use_self_loop:
        hdst_ref, loopw_ref, bias_ref, norm_ref, out_ref, acc_ref = refs
    else:
        bias_ref, norm_ref, out_ref, acc_ref = refs

    i = pl.program_id(0)          # dst tile       ("parallel", megacore-sharded)
    k = pl.program_id(1)          # contraction    ("arbitrary" reduction)

    # Prologue: zero the resident f32 accumulator for this dst tile.
    @pl.when(k == 0)
    def _():
        acc_ref[...] = jnp.zeros_like(acc_ref)

    # Block-sparse compute guard.  The matching DMA skip lives in the index_maps:
    # empty blocks re-return the previous block index so Pallas issues no new copy.
    @pl.when(mask_ref[i * num_k_blocks + k] != 0)
    def _():
        adj_blk = adj_ref[...].astype(jnp.bfloat16)   # int8 edge counts -> exact bf16
        acc_ref[...] += jnp.dot(adj_blk, ht_ref[...],
                                preferred_element_type=jnp.float32)

    # Epilogue: degree norm (factored out of the adjacency), bias, self-loop, ReLU;
    # store bf16 directly so the next layer's input is already lane-dense bf16.
    @pl.when(k == num_k_blocks - 1)
    def _():
        res = acc_ref[...] * norm_ref[...] + bias_ref[...]
        if use_self_loop:
            res = res + jnp.dot(hdst_ref[...], loopw_ref[...],
                                preferred_element_type=jnp.float32)
        out_ref[...] = jnp.maximum(res, 0.0).astype(out_ref.dtype)
        # TODO(synk): dropout (BaseRGCN default dropout=0 -> no-op here).


def rgcn_layer(graph, h_pad, w_rel, loop_w, bias, *, use_self_loop,
               tile_m, adj_buffers=2):
    """One RelGraphConv(basis) layer via pallas_call.

    graph  : dict from BaseRGCNPallas.preprocess_graph (int8 adjacency, norm column,
             block mask + DMA-dedup block-index arrays)
    h_pad  : (N_pad, D) bf16 node features (padded to a multiple of tile_m)
    w_rel  : (R, D, D) bf16 pre-combined relation weights (coef x basis, done in XLA)
    loop_w : (D, D)    bf16 self-loop weight
    bias   : (1, D)    f32 bias
    """
    n_pad, d = h_pad.shape
    num_rels = w_rel.shape[0]
    tile_k = graph["tile_k"]
    num_i = n_pad // tile_m
    num_k = graph["num_k"]

    # Per-relation feature transform hoisted out of the kernel: computed once per
    # layer (not once per dst tile), flattened along the contraction axis.
    ht = jnp.einsum("nd,rdo->rno", h_pad, w_rel,
                    preferred_element_type=jnp.float32)
    ht = ht.astype(jnp.bfloat16).reshape(num_rels * n_pad, d)

    def adj_idx(i, k, m, bi, bk):
        s = i * num_k + k
        return (bi[s], bk[s])

    def ht_idx(i, k, m, bi, bk):
        return (bk[i * num_k + k], 0)

    adj_kwargs = {}
    if adj_buffers != 2:
        # Deeper pipelining on the bandwidth-bound adj stream (sweep 3 on v5e/v6e).
        adj_kwargs["pipeline_mode"] = pl.Buffered(adj_buffers)
    adj_spec = pl.BlockSpec((tile_m, tile_k), adj_idx, **adj_kwargs)

    in_specs = [adj_spec, pl.BlockSpec((tile_k, d), ht_idx)]
    args = [graph["adj"], ht]
    if use_self_loop:
        in_specs += [pl.BlockSpec((tile_m, d), lambda i, k, m, bi, bk: (i, 0)),
                     pl.BlockSpec((d, d), lambda i, k, m, bi, bk: (0, 0))]
        args += [h_pad, loop_w]
    in_specs += [pl.BlockSpec((1, d), lambda i, k, m, bi, bk: (0, 0)),
                 pl.BlockSpec((tile_m, 1), lambda i, k, m, bi, bk: (i, 0))]
    args += [bias, graph["norm"]]

    kernel = functools.partial(rgcn_layer_kernel, use_self_loop=use_self_loop,
                               num_k_blocks=num_k)
    return pl.pallas_call(
        kernel,
        out_shape=jax.ShapeDtypeStruct((n_pad, d), jnp.bfloat16),
        grid_spec=pltpu.PrefetchScalarGridSpec(
            num_scalar_prefetch=3,
            grid=(num_i, num_k),                 # contraction axis LAST (reduction)
            in_specs=in_specs,
            out_specs=pl.BlockSpec((tile_m, d), lambda i, k, m, bi, bk: (i, 0)),
            scratch_shapes=[pltpu.VMEM((tile_m, d), jnp.float32)]),
        compiler_params=pltpu.CompilerParams(
            dimension_semantics=("parallel", "arbitrary"),
            vmem_limit_bytes=_vmem_limit_bytes()),
    )(graph["mask"], graph["blk_i"], graph["blk_k"], *args)


# ----------------------------------------------------------------------------
# BaseRGCN equivalent: params + graph preprocessing + forward loop (glue)
# ----------------------------------------------------------------------------
class BaseRGCNPallas:
    def __init__(self, num_nodes, h_dim, out_dim, num_rels, num_bases,
                 num_hidden_layers=1, dropout=0.0, use_self_loop=False,
                 tile_m=128, tile_k=512, adj_buffers=2, key=None):
        assert tile_m % 128 == 0 and h_dim % 128 == 0
        self.num_nodes = num_nodes
        self.h_dim = h_dim
        self.out_dim = out_dim
        self.num_rels = num_rels
        self.num_bases = num_rels if num_bases < 0 else num_bases
        self.num_hidden_layers = num_hidden_layers
        self.dropout = dropout
        self.use_self_loop = use_self_loop
        self.tile_m = tile_m
        self.adj_buffers = adj_buffers
        # Pad N up to a multiple of tile_m (no single-giant-tile fallback).
        self.n_pad = _round_up(num_nodes, tile_m)
        # Contraction tile over the flattened (relation, src) axis.
        total_k = num_rels * self.n_pad
        tk = tile_k
        while total_k % tk != 0:
            tk //= 2
        self.tile_k = max(tk, 128)

        key = jax.random.PRNGKey(0) if key is None else key
        self.layers = []
        # build_input_layer / build_output_layer are None in BaseRGCN, so the model is
        # exactly `num_hidden_layers` hidden layers (h_dim -> h_dim, relu).
        for _ in range(num_hidden_layers):
            key, k1, k2, k3 = jax.random.split(key, 4)
            basis = jax.random.normal(k1, (self.num_bases, h_dim, h_dim),
                                      jnp.float32) * (1.0 / jnp.sqrt(h_dim))
            coef = jax.random.normal(k2, (num_rels, self.num_bases), jnp.float32)
            loop_w = (jax.random.normal(k3, (h_dim, h_dim), jnp.float32)
                      * (1.0 / jnp.sqrt(h_dim)))
            bias = jnp.zeros((1, h_dim), jnp.float32)
            self.layers.append(dict(coef=coef, basis=basis,
                                    loop_w=loop_w, bias=bias))

    def preprocess_graph(self, src, dst, rel, norm):
        """Build the kernel-side graph representation ONCE per graph (O(E) scatters):
        int8 edge-count adjacency (normalization factored out), per-dst norm column,
        and the (dst-tile, contraction-tile) block mask + DMA-dedup index arrays."""
        n_pad, tm, tk, r = self.n_pad, self.tile_m, self.tile_k, self.num_rels
        num_i = n_pad // tm
        num_k = (r * n_pad) // tk

        col = rel * n_pad + src
        # Edge-count adjacency at 1 byte/element (small int counts are exact).
        # TODO(synk): use fp8 storage on v7x (no int MXU there), per perf review.
        adj = jnp.zeros((n_pad, r * n_pad), jnp.int32).at[dst, col].add(1)
        adj = adj.astype(jnp.int8)
        # Per-destination norm (assumes norm_e is a function of dst, e.g. 1/in-degree,
        # the standard RelGraphConv right-normalization).
        # TODO(synk): a general per-edge norm would have to stay folded into adj.
        norm_col = jnp.zeros((n_pad, 1), jnp.float32).at[dst, 0].max(norm)

        # O(E) block-occupancy mask from the edge list (no dense adjacency scan).
        mask2d = jnp.zeros((num_i, num_k), jnp.int32).at[dst // tm, col // tk].max(1)
        mask = mask2d.reshape(-1)

        # DMA-dedup block indices: for empty blocks the index_map re-returns the
        # previous step's block index, so Pallas issues no new copy for them.
        steps = jnp.arange(num_i * num_k, dtype=jnp.int32)
        last = lax.cummax(jnp.where(mask != 0, steps, -1), axis=0)
        safe = jnp.maximum(last, 0)
        blk_i = (safe // num_k).astype(jnp.int32)
        blk_k = (safe % num_k).astype(jnp.int32)

        return dict(adj=adj, norm=norm_col, mask=mask, blk_i=blk_i, blk_k=blk_k,
                    num_k=num_k, tile_k=tk)

    def forward(self, graph, h):
        n = h.shape[0]
        h_pad = jnp.zeros((self.n_pad, self.h_dim), jnp.bfloat16)
        h_pad = h_pad.at[:n].set(h.astype(jnp.bfloat16))
        for p in self.layers:
            # Basis combination hoisted out of the kernel (plain XLA einsum).
            w_rel = jnp.einsum("rb,bdo->rdo",
                               p["coef"], p["basis"]).astype(jnp.bfloat16)
            h_pad = rgcn_layer(graph, h_pad, w_rel,
                               p["loop_w"].astype(jnp.bfloat16), p["bias"],
                               use_self_loop=self.use_self_loop,
                               tile_m=self.tile_m, adj_buffers=self.adj_buffers)
        return h_pad[:n]


# Pure-JAX reference (same bf16 rounding points as the kernel, f32 accumulation,
# norm factored out as a per-dst row scale).
def rgcn_ref(layers, src, dst, rel, norm, num_nodes, num_rels, h, use_self_loop):
    bf = lambda x: x.astype(jnp.bfloat16).astype(jnp.float32)
    n = num_nodes
    counts = jnp.zeros((num_rels, n, n), jnp.float32).at[rel, dst, src].add(1.0)
    norm_col = jnp.zeros((n, 1), jnp.float32).at[dst, 0].max(norm)
    hf = h.astype(jnp.float32)
    for p in layers:
        W = bf(jnp.einsum("rb,bdo->rdo", p["coef"], p["basis"]))
        hb = bf(hf)
        agg = jnp.zeros((n, W.shape[-1]), jnp.float32)
        for r in range(num_rels):
            ht = bf(hb @ W[r])
            agg = agg + counts[r] @ ht
        out = agg * norm_col + p["bias"]
        if use_self_loop:
            out = out + hb @ bf(p["loop_w"])
        hf = bf(jnp.maximum(out, 0.0))
    return hf


if __name__ == "__main__":
    # Small but TPU-shaped setup: lane-dense feature dim (128), tileable node dim.
    N, D, R, B, E = 256, 128, 4, 2, 1024
    key = jax.random.PRNGKey(0)
    kh, ks, kd, kr, kp = jax.random.split(key, 5)

    h = jax.random.normal(kh, (N, D), jnp.float32)

    # Synthetic graph: E edges with random relation types; norm = 1 / in-degree(dst).
    src = jax.random.randint(ks, (E,), 0, N)
    dst = jax.random.randint(kd, (E,), 0, N)
    rel = jax.random.randint(kr, (E,), 0, R)
    # Make some (dst-tile, relation) blocks empty so the sparse DMA-skip path runs.
    rel = jnp.where(dst >= N // 2, rel % 2, rel)
    indeg = jnp.zeros((N,), jnp.float32).at[dst].add(1.0)
    norm = 1.0 / jnp.maximum(indeg[dst], 1.0)

    model = BaseRGCNPallas(num_nodes=N, h_dim=D, out_dim=D, num_rels=R,
                           num_bases=B, num_hidden_layers=2, dropout=0.0,
                           use_self_loop=True, tile_m=128, tile_k=512, key=kp)
    graph = model.preprocess_graph(src, dst, rel, norm)

    out = model.forward(graph, h)
    out = jax.block_until_ready(out)

    ref = rgcn_ref(model.layers, src, dst, rel, norm, N, R, h, use_self_loop=True)
    assert out.shape == (N, D)
    assert jnp.allclose(out.astype(jnp.float32), ref, rtol=2e-2, atol=2e-2), \
        "mismatch vs reference"

    print("KERNEL_OK")
</pallas_src>

<mosaic_0001>
module attributes {stable_mosaic.version = 11 : i64} {
  func.func @rgcn_layer_kernel(%arg0: i32, %arg1: i32, %arg2: memref<4xi32, #tpu.memory_space<smem>>, %arg3: memref<4xi32, #tpu.memory_space<smem>>, %arg4: memref<4xi32, #tpu.memory_space<smem>>, %arg5: memref<128x512xi8, #tpu.memory_space<vmem>>, %arg6: memref<512x128xbf16, #tpu.memory_space<vmem>>, %arg7: memref<128x128xbf16, #tpu.memory_space<vmem>>, %arg8: memref<128x128xbf16, #tpu.memory_space<vmem>>, %arg9: memref<1x128xf32, #tpu.memory_space<vmem>>, %arg10: memref<128x1xf32, #tpu.memory_space<vmem>>, %arg11: memref<128x128xbf16, #tpu.memory_space<vmem>>, %arg12: memref<128x128xf32, #tpu.memory_space<vmem>>) attributes {dimension_semantics = [#tpu.dimension_semantics<parallel>, #tpu.dimension_semantics<arbitrary>], iteration_bounds = array<i64: 2, 2>, scalar_prefetch = 3 : i64, scratch_operands = 1 : i64, tpu.core_type = #tpu.core_type<tc>, window_params = [{transform_indices = @transform_0, window_bounds = array<i64: 128, 512>}, {transform_indices = @transform_1, window_bounds = array<i64: 512, 128>}, {transform_indices = @transform_2, window_bounds = array<i64: 128, 128>}, {pipeline_mode = #tpu.pipeline_mode<synchronous>, transform_indices = @transform_3, window_bounds = array<i64: 128, 128>}, {pipeline_mode = #tpu.pipeline_mode<synchronous>, transform_indices = @transform_4, window_bounds = array<i64: 1, 128>}, {transform_indices = @transform_5, window_bounds = array<i64: 128, 1>}, {transform_indices = @transform_6, window_bounds = array<i64: 128, 128>}]} {
    %c0_i32 = arith.constant 0 : i32
    %0 = arith.cmpi eq, %arg1, %c0_i32 : i32
    %1 = arith.extui %0 : i1 to i32
    %c0_i32_0 = arith.constant 0 : i32
    %2 = arith.cmpi ne, %1, %c0_i32_0 : i32
    scf.if %2 {
      %cst = arith.constant 0.000000e+00 : f32
      %13 = vector.broadcast %cst : f32 to vector<128x128xf32>
      %c0 = arith.constant 0 : index
      %c0_4 = arith.constant 0 : index
      %14 = vector.load %arg12[%c0, %c0_4] : memref<128x128xf32, #tpu.memory_space<vmem>>, vector<128x128xf32>
      tpu.vector_store %arg12[%c0, %c0_4], %13 {strides = array<i32>} : memref<128x128xf32, #tpu.memory_space<vmem>>, vector<128x128xf32>,
    } else {
    }
    %c2_i32 = arith.constant 2 : i32
    %3 = arith.muli %arg0, %c2_i32 : i32
    %4 = arith.addi %3, %arg1 : i32
    %5 = arith.index_cast %4 : i32 to index
    %6 = memref.load %arg2[%5] : memref<4xi32, #tpu.memory_space<smem>>
    %c0_i32_1 = arith.constant 0 : i32
    %7 = arith.cmpi ne, %6, %c0_i32_1 : i32
    %8 = arith.extui %7 : i1 to i32
    %c0_i32_2 = arith.constant 0 : i32
    %9 = arith.cmpi ne, %8, %c0_i32_2 : i32
    scf.if %9 {
      %c0 = arith.constant 0 : index
      %c0_4 = arith.constant 0 : index
      %13 = vector.load %arg5[%c0, %c0_4] : memref<128x512xi8, #tpu.memory_space<vmem>>, vector<128x512xi8>
      %14 = arith.sitofp %13 : vector<128x512xi8> to vector<128x512xbf16>
      %c0_5 = arith.constant 0 : index
      %c0_6 = arith.constant 0 : index
      %15 = vector.load %arg12[%c0_5, %c0_6] : memref<128x128xf32, #tpu.memory_space<vmem>>, vector<128x128xf32>
      %c0_7 = arith.constant 0 : index
      %c0_8 = arith.constant 0 : index
      %16 = vector.load %arg6[%c0_7, %c0_8] : memref<512x128xbf16, #tpu.memory_space<vmem>>, vector<512x128xbf16>
      %cst = arith.constant dense<0.000000e+00> : vector<128x128xf32>
      %17 = tpu.matmul %14, %16, %cst {dimension_numbers = #tpu.dot_dimension_numbers<[1], [0], [0], [1], [0, 0, 1, 1], [], []>} : vector<128x512xbf16>, vector<512x128xbf16>, vector<128x128xf32> -> vector<128x128xf32>
      %18 = arith.addf %15, %17 : vector<128x128xf32>
      %c0_9 = arith.constant 0 : index
      %c0_10 = arith.constant 0 : index
      %19 = vector.load %arg12[%c0_9, %c0_10] : memref<128x128xf32, #tpu.memory_space<vmem>>, vector<128x128xf32>
      tpu.vector_store %arg12[%c0_9, %c0_10], %18 {strides = array<i32>} : memref<128x128xf32, #tpu.memory_space<vmem>>, vector<128x128xf32>,
    } else {
    }
    %c1_i32 = arith.constant 1 : i32
    %10 = arith.cmpi eq, %arg1, %c1_i32 : i32
    %11 = arith.extui %10 : i1 to i32
    %c0_i32_3 = arith.constant 0 : i32
    %12 = arith.cmpi ne, %11, %c0_i32_3 : i32
    scf.if %12 {
      %c0 = arith.constant 0 : index
      %c0_4 = arith.constant 0 : index
      %13 = vector.load %arg12[%c0, %c0_4] : memref<128x128xf32, #tpu.memory_space<vmem>>, vector<128x128xf32>
      %c0_5 = arith.constant 0 : index
      %c0_6 = arith.constant 0 : index
      %14 = vector.load %arg10[%c0_5, %c0_6] : memref<128x1xf32, #tpu.memory_space<vmem>>, vector<128x1xf32>
      %15 = vector.broadcast %14 : vector<128x1xf32> to vector<128x128xf32>
      %16 = arith.mulf %13, %15 : vector<128x128xf32>
      %c0_7 = arith.constant 0 : index
      %c0_8 = arith.constant 0 : index
      %17 = vector.load %arg9[%c0_7, %c0_8] : memref<1x128xf32, #tpu.memory_space<vmem>>, vector<1x128xf32>
      %18 = vector.broadcast %17 : vector<1x128xf32> to vector<128x128xf32>
      %19 = arith.addf %16, %18 : vector<128x128xf32>
      %c0_9 = arith.constant 0 : index
      %c0_10 = arith.constant 0 : index
      %20 = vector.load %arg7[%c0_9, %c0_10] : memref<128x128xbf16, #tpu.memory_space<vmem>>, vector<128x128xbf16>
      %c0_11 = arith.constant 0 : index
      %c0_12 = arith.constant 0 : index
      %21 = vector.load %arg8[%c0_11, %c0_12] : memref<128x128xbf16, #tpu.memory_space<vmem>>, vector<128x128xbf16>
      %cst = arith.constant dense<0.000000e+00> : vector<128x128xf32>
      %22 = tpu.matmul %20, %21, %cst {dimension_numbers = #tpu.dot_dimension_numbers<[1], [0], [0], [1], [0, 0, 1, 1], [], []>} : vector<128x128xbf16>, vector<128x128xbf16>, vector<128x128xf32> -> vector<128x128xf32>
      %23 = arith.addf %19, %22 : vector<128x128xf32>
      %cst_13 = arith.constant 0.000000e+00 : f32
      %24 = vector.broadcast %cst_13 : f32 to vector<128x128xf32>
      %25 = arith.maximumf %23, %24 : vector<128x128xf32>
      %26 = arith.truncf %25 : vector<128x128xf32> to vector<128x128xbf16>
      %c0_14 = arith.constant 0 : index
      %c0_15 = arith.constant 0 : index
      %27 = vector.load %arg11[%c0_14, %c0_15] : memref<128x128xbf16, #tpu.memory_space<vmem>>, vector<128x128xbf16>
      tpu.vector_store %arg11[%c0_14, %c0_15], %26 {strides = array<i32>} : memref<128x128xbf16, #tpu.memory_space<vmem>>, vector<128x128xbf16>,
    } else {
    }
    return
  }
  func.func @transform_0(%arg0: i32, %arg1: i32, %arg2: memref<4xi32, #tpu.memory_space<smem>>, %arg3: memref<4xi32, #tpu.memory_space<smem>>, %arg4: memref<4xi32, #tpu.memory_space<smem>>) -> (i32, i32) {
    %c2_i32 = arith.constant 2 : i32
    %0 = arith.muli %arg0, %c2_i32 : i32
    %1 = arith.addi %0, %arg1 : i32
    %2 = arith.index_cast %1 : i32 to index
    %3 = memref.load %arg3[%2] : memref<4xi32, #tpu.memory_space<smem>>
    %4 = arith.index_cast %1 : i32 to index
    %5 = memref.load %arg4[%4] : memref<4xi32, #tpu.memory_space<smem>>
    %c0_i32 = arith.constant 0 : i32
    return %3, %5 : i32, i32
  }
  func.func @transform_1(%arg0: i32, %arg1: i32, %arg2: memref<4xi32, #tpu.memory_space<smem>>, %arg3: memref<4xi32, #tpu.memory_space<smem>>, %arg4: memref<4xi32, #tpu.memory_space<smem>>) -> (i32, i32) {
    %c2_i32 = arith.constant 2 : i32
    %0 = arith.muli %arg0, %c2_i32 : i32
    %1 = arith.addi %0, %arg1 : i32
    %2 = arith.index_cast %1 : i32 to index
    %3 = memref.load %arg4[%2] : memref<4xi32, #tpu.memory_space<smem>>
    %c0_i32 = arith.constant 0 : i32
    %c0_i32_0 = arith.constant 0 : i32
    return %3, %c0_i32 : i32, i32
  }
  func.func @transform_2(%arg0: i32, %arg1: i32, %arg2: memref<4xi32, #tpu.memory_space<smem>>, %arg3: memref<4xi32, #tpu.memory_space<smem>>, %arg4: memref<4xi32, #tpu.memory_space<smem>>) -> (i32, i32) {
    %c0_i32 = arith.constant 0 : i32
    %c0_i32_0 = arith.constant 0 : i32
    return %arg0, %c0_i32 : i32, i32
  }
  func.func @transform_3(%arg0: i32, %arg1: i32, %arg2: memref<4xi32, #tpu.memory_space<smem>>, %arg3: memref<4xi32, #tpu.memory_space<smem>>, %arg4: memref<4xi32, #tpu.memory_space<smem>>) -> (i32, i32) {
    %c0_i32 = arith.constant 0 : i32
    %c0_i32_0 = arith.constant 0 : i32
    %c0_i32_1 = arith.constant 0 : i32
    return %c0_i32, %c0_i32_0 : i32, i32
  }
  func.func @transform_4(%arg0: i32, %arg1: i32, %arg2: memref<4xi32, #tpu.memory_space<smem>>, %arg3: memref<4xi32, #tpu.memory_space<smem>>, %arg4: memref<4xi32, #tpu.memory_space<smem>>) -> (i32, i32) {
    %c0_i32 = arith.constant 0 : i32
    %c0_i32_0 = arith.constant 0 : i32
    %c0_i32_1 = arith.constant 0 : i32
    return %c0_i32, %c0_i32_0 : i32, i32
  }
  func.func @transform_5(%arg0: i32, %arg1: i32, %arg2: memref<4xi32, #tpu.memory_space<smem>>, %arg3: memref<4xi32, #tpu.memory_space<smem>>, %arg4: memref<4xi32, #tpu.memory_space<smem>>) -> (i32, i32) {
    %c0_i32 = arith.constant 0 : i32
    %c0_i32_0 = arith.constant 0 : i32
    return %arg0, %c0_i32 : i32, i32
  }
  func.func @transform_6(%arg0: i32, %arg1: i32, %arg2: memref<4xi32, #tpu.memory_space<smem>>, %arg3: memref<4xi32, #tpu.memory_space<smem>>, %arg4: memref<4xi32, #tpu.memory_space<smem>>) -> (i32, i32) {
    %c0_i32 = arith.constant 0 : i32
    %c0_i32_0 = arith.constant 0 : i32
    return %arg0, %c0_i32 : i32, i32
  }
}

</mosaic_0001>

<bundles_post_ra>
// kernel: tpu_custom_call.1
= control target key start
LH: loop header
LB: loop body
LE: loop exit
PB: predicated region body
PF: predicated region fallthrough
CT: control target
= control target key end

     0   :  { %s2432_s15 = smov [#allocation4]   ;;  %s2433_s16 = smov [#allocation5]   ;;  %s2997_s0 = inlined_call_operand.vmem [shape: s32[4], index: 0, kind: input, shape index: {}]   ;;  %s2998_s3 = inlined_call_operand.hbm [shape: s8[256,1024], index: 3, kind: input, shape index: {}]   ;;  %s2999_s4 = inlined_call_operand.hbm [shape: bf16[1024,128], index: 4, kind: input, shape index: {}]   ;;  %s3000_s5 = inlined_call_operand.vmem [shape: bf16[256,128], index: 5, kind: input, shape index: {}]   ;;  %s3001_s6 = inlined_call_operand.vmem [shape: bf16[128,128], index: 6, kind: input, shape index: {}]   ;;  %s3002_s7 = inlined_call_operand.vmem [shape: f32[1,128], index: 7, kind: input, shape index: {}]   ;;  %s3003_s8 = inlined_call_operand.vmem [shape: f32[256,1], index: 8, kind: input, shape index: {}]   ;;  %s3004_s9 = inlined_call_operand.hbm [shape: bf16[256,128], index: 9, kind: output, shape index: {}]   ;;  %s3005_s1 = inlined_call_operand.vmem [shape: s32[4], index: 1, kind: input, shape index: {}]   ;;  %s3006_s2 = inlined_call_operand.vmem [shape: s32[4], index: 2, kind: input, shape index: {}]  }
   0x1   :  { %3018 = sst [smem:[#allocation35_spill]] %s3000_s5  ;;  %s15_s11 = sshll.u32 %s2997_s0, 4  ;;  %s16_s11 = int_to_ptr.vmem [resolvable:$true] %s15_s11 }
   0x2   :  { %3019 = sst [smem:[#allocation36_spill]] %s3001_s6  ;;  %s20_s14 = sshll.u32 %s3005_s1, 4  ;;  %s21_s14 = int_to_ptr.vmem [resolvable:$true] %s20_s14 }
   0x3   :  { %3020 = sst [smem:[#allocation37_spill]] %s3002_s7  ;;  %s25_s19 = sshll.u32 %s3006_s2, 4  ;;  %s26_s19 = int_to_ptr.vmem [resolvable:$true] %s25_s19 }
   0x4   :  { %3021 = sst [smem:[#allocation38_spill]] %s3003_s8  ;;  %s2434_s20 = smov [#allocation6]  }
   0x5   :  { %3022 = sst [smem:[#allocation39_spill]] %s3004_s9 }
   0x6   :  { %18 = dma.vmem_to_smem %s16_s11, 16, %s2432_s15, [#allocation3] }
   0x7   :  { %23 = dma.vmem_to_smem %s21_s14, 16, %s2433_s16, [#allocation3] }
   0x8   :  { %28 = dma.vmem_to_smem %s26_s19, 16, %s2434_s20, [#allocation3] }
   0x9   :  { %2362 = dma.done.wait [#allocation3], 48 }
   0xa   :  { %2363 = vsyncadd [#allocation3], 4294967248 }
   0xb   :  { %31 = sfence }
   0xc   :  { %32 = vsyncpa [#allocation8], 0 }
   0xd   :  { %34 = vsyncpa [#allocation8 + $0x1], 0 }
   0xe   :  { %35 = vsyncpa [#allocation11], 0 }
   0xf   :  { %37 = vsyncpa [#allocation11 + $0x1], 0 }
  0x10   :  { %38 = vsyncpa [#allocation9], 0 }
  0x11   :  { %40 = vsyncpa [#allocation9 + $0x1], 0  ;;  %s2503_s0 = smov 0   ;;  %s2505_s1 = smov 0  }
  0x12   :  { %s2507_s21 = smov 0   ;;  %s2509_s22 = smov 0  }
  0x13   :  { %s2511_s2 = smov 0   ;;  %s2513_s23 = smov 0  }
  0x14   :  { %s2515_s24 = smov 0   ;;  %s2517_s25 = smov 0  }
  0x15   :  { %s2519_s26 = smov 0   ;;  %s2521_s27 = smov 0  }
  0x16   :  { %s2523_s28 = smov 0   ;;  %s2525_s29 = smov 0  }
  0x17   :  { %s2527_s30 = smov 0   ;;  %s2529_s10 = smov 0  }
  0x18 LB: > { %3023 = sst [smem:[#allocation23_spill]] %s2386_s21  ;;  %s55_s11 = sadd.s32 1, %s2422_s29  ;;  %s2430_s10 = sphi %s2529_s10, %s46_s10   ;;  %s2426_s30 = sphi %s2527_s30, %s3073_s30   ;;  %s2422_s29 = sphi %s2525_s29, %s3072_s29   ;;  %s2418_s28 = sphi %s2523_s28, %s3081_s28   ;;  %s2414_s27 = sphi %s2521_s27, %s3070_s27   ;;  %s2410_s26 = sphi %s2519_s26, %s3069_s26   ;;  %s2406_s25 = sphi %s2517_s25, %s3080_s25   ;;  %s2402_s24 = sphi %s2515_s24, %s3079_s24   ;;  %s2398_s23 = sphi %s2513_s23, %s3078_s23   ;;  %s2394_s2 = sphi %s2511_s2, %s3077_s2   ;;  %s2390_s22 = sphi %s2509_s22, %s3076_s22   ;;  %s2386_s21 = sphi %s2507_s21, %s3066_s21   ;;  %s2382_s1 = sphi %s2505_s1, %s3075_s1   ;;  %s2378_s0 = sphi %s2503_s0, %s3074_s0  }
  0x19   : > { %3024 = sst [smem:[#allocation24_spill]] %s2410_s26  ;;  %s58_s12 = sadd.s32 1, %s2426_s30 }
  0x1a   : > { %3025 = sst [smem:[#allocation25_spill]] %s2414_s27  ;;  %p56_p0 = scmp.ge.s32.totalorder %s55_s11, 2 }
  0x1b   : > { %3026 = sst [smem:[#allocation26_spill]] %s2418_s28  ;;  %s1676_s13 = sshll.u32 %s2426_s30, 1 }
  0x1c   : > { %3027 = sst [smem:[#allocation27_spill]] %s2422_s29  ;;  %s3007_s14 = sadd.s32 4294967295, %s2430_s10  }
  0x1d   : > { %3028 = sst [smem:[#allocation28_spill]] %s2426_s30  ;;  %s2576_s15 = sadd.s32 %s2422_s29, %s1676_s13 }
  0x1e   : > { %s3083_s11 = smov (%p56_p0, %s55_s11), 0  ;;  %s3085_s12 = smov (!%p56_p0, %s58_s12), %s2426_s30 }
  0x1f   : > { %3029 = sst [smem:[#allocation29_spill]] %s3083_s11  ;;  %p60_p1 = scmp.ge.s32.totalorder %s3085_s12, 2 }
  0x20   : > { %s2583_s17 = sld [smem:[#allocation5 + %s2576_s15]]  ;;  %p82_p2 = scmp.ne.s32.totalorder %s2410_s26, %s2406_s25 }
  0x21   : > { %s65_s18 = sld [smem:[#allocation6 + %s2576_s15]]  ;;  %p88_p3 = scmp.ne.s32.totalorder %s2406_s25, %s2402_s24 }
  0x22   : > { %s3087_s12 = smov (%p60_p1, %s3085_s12), 0  ;;  %p83_p4 = scmp.eq.s32.totalorder %s2430_s10, 0 }
  0x23   : > { %3030 = sst [smem:[#allocation30_spill]] %s3087_s12  ;;  %p2594_p5 = scmp.eq.s32.totalorder %s3007_s14, 0 }
  0x24   : > { %s1677_s20 = sshll.u32 %s3087_s12, 1  ;;  %s100_s13 = sld [smem:[#allocation6 + %s2576_s15]] }
  0x25   : > { %s67_s24 = sadd.s32 %s1677_s20, %s3083_s11  ;;  %p2603_p6 = por %p2594_p5, %p88_p3 }
  0x26   : > { %s68_s14 = sld [smem:[#allocation5 + %s67_s24]]  ;;  %s75_s29 = sadd.s32 1, %s2410_s26 }
  0x27   : > { %s69_s9 = sld [smem:[#allocation6 + %s67_s24]]  ;;  %p2613_p7 = por %p83_p4, %p82_p2 }
  0x28   : > { %s103_s6 = sld [smem:[#allocation6 + %s67_s24]]  ;;  %p120_p8 = scmp.ne.s32.totalorder %s2394_s2, %s2390_s22 }
  0x29   : > { %s107_s20 = sadd.s32 1, %s2398_s23  ;;  %s224_s11 = ssub.s32 %s2426_s30, %s3087_s12 }
  0x2a   : > { %p2624_p9 = por %p120_p8, %p2594_p5  ;;  %p225_p10 = scmp.eq.s32.totalorder %s224_s11, 0 }
  0x2b   : > { %s227_s8 = sadd.s32 1, %s2386_s21  ;;  %p237_p11 = scmp.ne.s32.totalorder %s2386_s21, %s2382_s1 }
  0x2c   : > { %s70_s5 = ssub.s32 %s2583_s17, %s68_s14  ;;  %s3035_s28 = sadd.s32 4294967295, %s2430_s10  }
  0x2d   : > { %p238_p12 = scmp.eq.s32.totalorder %s3035_s28, 3  ;;  %s71_s22 = ssub.s32 %s65_s18, %s69_s9 }
  0x2e   : > { %p243_p13 = scmp.ne.s32.totalorder %s2382_s1, %s2378_s0  ;;  %s72_s19 = sor.u32 %s71_s22, %s70_s5 }
  0x2f   : > { %s104_s24 = ssub.s32 %s100_s13, %s103_s6  ;;  %p73_p0 = scmp.eq.s32.totalorder %s72_s19, 0 }
  0x30   : > { %p105_p1 = scmp.eq.s32.totalorder %s104_s24, 0  ;;  %p2645_p2 = por %p238_p12, %p237_p11 }
  0x31   : > { %s2637_s11 = scalar_select %p225_p10, %s2386_s21, %s227_s8  }
  0x32   : > { %s2640_s14 = scalar_select %p73_p0, %s2410_s26, %s75_s29  }
  0x33   : > { %3036 = sst [smem:[#allocation31_spill]] %s2637_s11  ;;  %s3040_s5 = sadd.s32 4294967294, %s2430_s10  }
  0x34   : > { %3037 = sst [smem:[#allocation32_spill]] %s2640_s14  ;;  %p244_p3 = scmp.eq.s32.totalorder %s3040_s5, 3 }
  0x35   : > { %s2643_s28 = scalar_select %p105_p1, %s2398_s23, %s107_s20  }
  0x36   : > { %p3017_p5 = scmp.lt.s32.totalorder %s2430_s10, 4  ;;  %p2652_p8 = por %p244_p3, %p243_p13 }
  0x37   : > { %3038 = sst [smem:[#allocation33_spill]] %s2643_s28  ;;  %s270_s8 = sand.u32 1, %s2410_s26  }
  0x38   : > { %s3041_s6 = scalar_select %p2652_p8, 1, 0 }
  0x39   : > { %p114_p10 = scmp.ne.s32.totalorder %s2398_s23, %s2394_s2  ;;  %s1682_s29 = sshll.u32 %s270_s8, 7 }
  0x3a   : > { %3042 = sst [smem:[#allocation34_spill]] %s3041_s6  ;;  %p2663_p0 = pnand %p3017_p5, %p2613_p7 }
  0x3b   : > { %s2023_s18 = scalar_select %p2613_p7, [#allocation5], [#allocation13] }
  0x3c   : > { %s2024_s13 = scalar_select %p2613_p7, %s2576_s15, 0 }
  0x3d   : > { %s3089_s18 = smov (!%p3017_p5, %s2023_s18), [#allocation16]  ;;  %p2682_p11 = por %p114_p10, %p83_p4 }
  0x3e   : > { %s3091_s13 = smov (!%p3017_p5, %s2024_s13), 0  ;;  %s274_s5 = scalar_lea.vmem [#allocation7], %s1682_s29 }
  0x3f   : > { %s2025_s20 = scalar_select %p2613_p7, [#allocation6], [#allocation14] }
  0x40   : > { %s277_s22 = sld [smem:[%s3089_s18 + %s3091_s13]]  ;;  %s2686_s12 = sshll.u32 %s274_s5, 4  ;;  %s290_s12 = int_to_ptr.vmem [resolvable:$true] %s2686_s12 }
  0x41   : > { %s3093_s20 = smov (!%p3017_p5, %s2025_s20), [#allocation17]  ;;  %p2692_p12 = pnand %p3017_p5, %p2682_p11 }
  0x42   : > { %s278_s24 = sld [smem:[%s3093_s20 + %s3091_s13]]  ;;  %s299_s14 = sand.u32 1, %s2398_s23  }
  0x43   : > { %s2703_s13 = sshll.u32 %s299_s14, 8  ;;  %s271_s5 = scalar_lea.sflag [#allocation8], %s270_s8 }
  0x44   : > { %p2222_p1 = pneg %p2663_p0  ;;  %s2225_s21 = scalar_lea.hbm %s2998_s3, 512 }
  0x46   : > { %s1901_s18 = sshll.u32 %s277_s22, 5 }
  0x48   : > { %s1685_s30 = sshll.u32 %s278_s24, 2 }
  0x49   : > { %s284_s26 = sadd.s32 %s1901_s18, %s1685_s30 }
  0x4a   : > { %s1687_s28 = sshll.u32 %s284_s26, 3 }
  0x4b   : > { %s286_s29 = scalar_lea.hbm %s2998_s3, %s1687_s28 }
  0x4c   : > { %s287_s20 = sshll.u32 %s286_s29, 4  ;;  %s288_s20 = int_to_ptr.hbm [resolvable:$true] %s287_s20 }
  0x4d   : > { %s2218_s6 = sshra.s32 %s288_s20, 4  ;;  %s2219_s6 = int_to_ptr.hbm [resolvable:$true] %s2218_s6 }
  0x4e   : > { %s2220_s22 = scalar_lea.hbm %s2219_s6, 128  ;;  %p2226_p5 = scmp.lt.s32.totalorder %s2219_s6, %s2998_s3 }
  0x4f   : > { %p2221_p13 = scmp.ne.s32.totalorder %s2219_s6, %s2220_s22  ;;  %p2227_p4 = scmp.lt.s32.totalorder %s2225_s21, %s2220_s22 }
  0x51   : > { %p2223_p3 = pnand %p2222_p1, %p2221_p13  ;;  %p2228_p8 = por %p2227_p4, %p2226_p5 }
  0x53   : > { %p2224_p10 = pneg %p2223_p3 }
  0x55   : > { %p2229_p7 = pnand %p2228_p8, %p2224_p10 }
  0x57   : > { %2232 = shalt.err (!%p2229_p7)
}
  0x58   : > { %s2435_s8 = smov 1024   ;;  %s2436_s24 = smov 512  }
  0x59   : > { %s2437_s18 = smov 32   ;;  %s3095_s15 = smov (!%p2682_p11, %s2576_s15), 0 }
  0x5a   : > { %2042 = dma.hbm_to_vmem [thread:$0]  (!%p2663_p0), %s288_s20, 2048, %s290_s12, %s271_s5, %s2435_s8, %s2436_s24, %s2437_s18  }
  0x5b   : > { %s2028_s6 = scalar_select %p2682_p11, [#allocation6], [#allocation15] }
  0x5c   : > { %p3046_p5 = scmp.lt.s32.totalorder %s2430_s10, 4  ;;  %p3048_p4 = scmp.lt.s32.totalorder %s2430_s10, 5 }
  0x5d   : > { %p3049_p7 = scmp.ge.s32.totalorder %s2430_s10, 1  ;;  %s303_s26 = scalar_lea.vmem [#allocation10], %s2703_s13 }
  0x5e   : > { %s3097_s6 = smov (!%p3046_p5, %s2028_s6), [#allocation18]  ;;  %p3047_p8 = pmov %p3046_p5 }
  0x5f   : > { %p2732_p13 = pnand %p3049_p7, %p3048_p4  ;;  %s314_s17 = sshll.u32 %s303_s26, 4  ;;  %s315_s17 = int_to_ptr.vmem [resolvable:$true] %s314_s17 }
  0x60   : > { %s3099_s15 = smov (!%p3047_p8, %s3095_s15), 0  ;;  %s300_s21 = scalar_lea.sflag [#allocation11], %s299_s14 }
  0x61   : > { %s306_s22 = sld [smem:[%s3097_s6 + %s3099_s15]]  ;;  %p2252_p11 = pneg %p2692_p12 }
  0x62   : > { %s2255_s8 = scalar_lea.hbm %s2999_s4, 512 }
  0x67   : > { %s1902_s30 = sshll.u32 %s306_s22, 8 }
  0x68   : > { %s311_s19 = scalar_lea.hbm %s2999_s4, %s1902_s30 }
  0x69   : > { %s312_s5 = sshll.u32 %s311_s19, 4  ;;  %s313_s5 = int_to_ptr.hbm [resolvable:$true] %s312_s5 }
  0x6a   : > { %s2248_s11 = sshra.s32 %s313_s5, 4  ;;  %s2249_s11 = int_to_ptr.hbm [resolvable:$true] %s2248_s11 }
  0x6b   : > { %s2250_s28 = scalar_lea.hbm %s2249_s11, 256  ;;  %p2256_p10 = scmp.lt.s32.totalorder %s2249_s11, %s2999_s4 }
  0x6c   : > { %p2251_p0 = scmp.ne.s32.totalorder %s2249_s11, %s2250_s28  ;;  %p2257_p5 = scmp.lt.s32.totalorder %s2255_s8, %s2250_s28 }
  0x6e   : > { %p2253_p1 = pnand %p2252_p11, %p2251_p0  ;;  %p2258_p8 = por %p2257_p5, %p2256_p10 }
  0x70   : > { %p2254_p3 = pneg %p2253_p1 }
  0x72   : > { %p2259_p4 = pnand %p2258_p8, %p2254_p3 }
  0x74   : > { %2262 = shalt.err (!%p2259_p4)
}
  0x75   : > { %s2438_s14 = smov 64   ;;  %s2439_s6 = smov 4  }
  0x76   : > { %2047 = dma.hbm_to_vmem [thread:$0]  (!%p2692_p12), %s313_s5, 4096, %s315_s17, %s300_s21, %s2438_s14, %s2438_s14, %s2439_s6  }
  0x77   : > { %344 = sbr.rel (%p2732_p13) target bundleno = 710 (0x2c6), region = 44  ;;  %s346_s22 = sand.u32 (!%p2732_p13), 1, %s2406_s25  }
  0x78   : > { %s1693_s26 = sshll.u32 (!%p2732_p13), %s346_s22, 7  ;;  %s347_s30 = scalar_lea.sflag (!%p2732_p13), [#allocation8], %s346_s22 }
  0x79   : > { %s2755_s12 = scalar_lea.vmem (!%p2732_p13), [#allocation7], %s1693_s26 }
  0x7c   : > { %2365 = dma.done.wait (%p2603_p6), %s347_s30, 2048  }
  0x7d   : > { %2367 = vsyncadd (%p2603_p6), %s347_s30, 4294965248  ;;  %s356_s20 = sand.u32 1, %s2394_s2  }
  0x7e   : > { %s1694_s7 = sshll.u32 %s356_s20, 8  ;;  %s357_s17 = scalar_lea.sflag [#allocation11], %s356_s20 }
  0x7f   : > { %s2762_s19 = scalar_lea.vmem [#allocation10], %s1694_s7 }
  0x80   : > { %2369 = dma.done.wait (%p2624_p9), %s357_s17, 4096  }
  0x81   : > { %2371 = vsyncadd (%p2624_p9), %s357_s17, 4294963200  ;;  %s3051_s29 = sld [smem:[#allocation26_spill]]  ;;  %s402_s5 = sand.u32 1, %s2382_s1  }
  0x82   : > { %s1695_s16 = sshll.u32 %s402_s5, 6  ;;  %s3052_s8 = sld [smem:[#allocation35_spill]] }
  0x83   : > { %s3053_s27 = sld [smem:[#allocation38_spill]]  ;;  %s2782_s22 = scalar_lea.vmem [#allocation12], %s1695_s16 }
  0x84   : > { %s3054_s26 = sld [smem:[#allocation25_spill]] }
  0x87   : > { %s1696_s21 = sshll.u32 %s3051_s29, 4 }
  0x88   : > { %p416_p6 = scmp.lt.s32.totalorder %s1696_s21, 31 }
  0x8a   : > { %s3101_s21 = smov (!%p416_p6, %s1696_s21), 31  ;;  %p1700_p9 = scmp.ne.s32.totalorder %s3054_s26, 0 }
  0x8b   : > { %s1697_s11 = sshll.u32 %s3101_s21, 2  ;;  %s1699_s28 = sshll.u32 %s3101_s21, 3 }
  0x8c   : > { %s2775_s24 = scalar_lea.vmem %s3052_s8, %s1697_s11  ;;  %s2780_s6 = scalar_lea.vmem %s3053_s27, %s1699_s28 }
  0x8d   : > { %431 = sbr.rel (%p1700_p9) target bundleno = 163 (0xa3), region = 56 }
  0x92   : > { %v2440_v0 = vmov 0.0  }
  0x93   : > { %432 = vst [vmem:[#allocation2 + $0x30] sm:$0xff] %v2440_v0 }
  0x94   : > { %433 = vst [vmem:[#allocation2] sm:$0xff] %v2440_v0 }
  0x95   : > { %434 = vst [vmem:[#allocation2 + $0x58] sm:$0xff] %v2440_v0 }
  0x96   : > { %435 = vst [vmem:[#allocation2 + $0x18] sm:$0xff] %v2440_v0 }
  0x97   : > { %436 = vst [vmem:[#allocation2 + $0x50] sm:$0xff] %v2440_v0 }
  0x98   : > { %437 = vst [vmem:[#allocation2 + $0x68] sm:$0xff] %v2440_v0 }
  0x99   : > { %438 = vst [vmem:[#allocation2 + $0x8] sm:$0xff] %v2440_v0 }
  0x9a   : > { %439 = vst [vmem:[#allocation2 + $0x48] sm:$0xff] %v2440_v0 }
  0x9b   : > { %440 = vst [vmem:[#allocation2 + $0x40] sm:$0xff] %v2440_v0 }
  0x9c   : > { %441 = vst [vmem:[#allocation2 + $0x20] sm:$0xff] %v2440_v0 }
  0x9d   : > { %442 = vst [vmem:[#allocation2 + $0x10] sm:$0xff] %v2440_v0 }
  0x9e   : > { %443 = vst [vmem:[#allocation2 + $0x38] sm:$0xff] %v2440_v0 }
  0x9f   : > { %444 = vst [vmem:[#allocation2 + $0x60] sm:$0xff] %v2440_v0 }
  0xa0   : > { %445 = vst [vmem:[#allocation2 + $0x70] sm:$0xff] %v2440_v0 }
  0xa1   : > { %446 = vst [vmem:[#allocation2 + $0x78] sm:$0xff] %v2440_v0 }
  0xa2   : > { %447 = vst [vmem:[#allocation2 + $0x28] sm:$0xff] %v2440_v0 }
  0xa3 PF: > { %s3055_s30 = sld [smem:[#allocation26_spill]] }
  0xa4   : > { %s3056_s20 = sld [smem:[#allocation25_spill]] }
  0xa9   : > { %s1701_s7 = sshll.u32 %s3055_s30, 1 }
  0xaa   : > { %s449_s17 = sadd.s32 %s3056_s20, %s1701_s7 }
  0xab   : > { %s450_s29 = sld [smem:[#allocation4 + %s449_s17]] }
  0xb1   : > { %p1702_p12 = scmp.eq.s32.totalorder %s450_s29, 0 }
  0xb3   : > { %454 = sbr.rel (%p1702_p12) target bundleno = 477 (0x1dd), region = 60 }
  0xb8   : > { %v1910_v1 = vld [vmem:[%s2762_s19 + $0x38] sm:$0xff]  ;;  %v1909_v5 = vld [vmem:[%s2762_s19 + $0x30] sm:$0xff]  ;;  %v1908_v9 = vld [vmem:[%s2762_s19 + $0x28] sm:$0xff] }
  0xb9   : > { %v1918_v2 = vld [vmem:[%s2762_s19 + $0x78] sm:$0xff]  ;;  %903 = vmatpush.bf16.msra.mxu0 %v1910_v1  ;;  %v1917_v6 = vld [vmem:[%s2762_s19 + $0x70] sm:$0xff]  ;;  %v1916_v10 = vld [vmem:[%s2762_s19 + $0x68] sm:$0xff] }
  0xba   : > { %v1926_v3 = vld [vmem:[%s2762_s19 + $0xb8] sm:$0xff]  ;;  %952 = vmatpush.bf16.msra.mxu1 %v1918_v2  ;;  %v1925_v7 = vld [vmem:[%s2762_s19 + $0xb0] sm:$0xff]  ;;  %v1924_v11 = vld [vmem:[%s2762_s19 + $0xa8] sm:$0xff] }
  0xbb   : > { %v1934_v4 = vld [vmem:[%s2762_s19 + $0xf8] sm:$0xff]  ;;  %1001 = vmatpush.bf16.msra.mxu2 %v1926_v3  ;;  %v1933_v8 = vld [vmem:[%s2762_s19 + $0xf0] sm:$0xff]  ;;  %v1932_v12 = vld [vmem:[%s2762_s19 + $0xe8] sm:$0xff] }
  0xbc   : > { %1050 = vmatpush.bf16.msra.mxu3 %v1934_v4  ;;  %v1907_v13 = vld [vmem:[%s2762_s19 + $0x20] sm:$0xff]  ;;  %v1906_v17 = vld [vmem:[%s2762_s19 + $0x18] sm:$0xff]  ;;  %v1905_v21 = vld [vmem:[%s2762_s19 + $0x10] sm:$0xff] }
  0xbd   : > { %904 = vmatpush.bf16.msra.mxu0 %v1909_v5  ;;  %v1915_v14 = vld [vmem:[%s2762_s19 + $0x60] sm:$0xff]  ;;  %v1914_v18 = vld [vmem:[%s2762_s19 + $0x58] sm:$0xff]  ;;  %v1913_v22 = vld [vmem:[%s2762_s19 + $0x50] sm:$0xff] }
  0xbe   : > { %953 = vmatpush.bf16.msra.mxu1 %v1917_v6  ;;  %v1923_v15 = vld [vmem:[%s2762_s19 + $0xa0] sm:$0xff]  ;;  %v1922_v19 = vld [vmem:[%s2762_s19 + $0x98] sm:$0xff]  ;;  %v1921_v23 = vld [vmem:[%s2762_s19 + $0x90] sm:$0xff] }
  0xbf   : > { %1002 = vmatpush.bf16.msra.mxu2 %v1925_v7  ;;  %v1931_v16 = vld [vmem:[%s2762_s19 + $0xe0] sm:$0xff]  ;;  %v1930_v20 = vld [vmem:[%s2762_s19 + $0xd8] sm:$0xff]  ;;  %v456_v25 = vld [vmem:[%s2755_s12 + $0x8] sm:$0xff] }
  0xc0   : > { %1051 = vmatpush.bf16.msra.mxu3 %v1933_v8  ;;  %v455_v24 = vld [vmem:[%s2755_s12] sm:$0xff]  ;;  %v1929_v26 = vld [vmem:[%s2762_s19 + $0xd0] sm:$0xff]  ;;  %v458_v28 = vld [vmem:[%s2755_s12 + $0x18] sm:$0xff]  ;;  %v472_v31 = vunpack.c.0.s8 %v456_v25  ;;  %v476_v32 = vunpack.c.1.s8 %v456_v25  ;;  %v480_v59 = vunpack.c.2.s8 %v456_v25  ;;  %v484_v60 = vunpack.c.3.s8 %v456_v25 }
  0xc1   : > { %905 = vmatpush.bf16.msra.mxu0 %v1908_v9  ;;  %v457_v27 = vld [vmem:[%s2755_s12 + $0x10] sm:$0xff]  ;;  %v471_v29 = vunpack.c.0.s8 %v455_v24  ;;  %v475_v30 = vunpack.c.1.s8 %v455_v24  ;;  %v1904_v33 = vld [vmem:[%s2762_s19 + $0x8] sm:$0xff]  ;;  %v474_v37 = vunpack.c.0.s8 %v458_v28  ;;  %v478_v38 = vunpack.c.1.s8 %v458_v28  ;;  %v1903_v45 = vld [vmem:[%s2762_s19] sm:$0xff] }
  0xc2   : > { %954 = vmatpush.bf16.msra.mxu1 %v1916_v10  ;;  %v1912_v34 = vld [vmem:[%s2762_s19 + $0x48] sm:$0xff]  ;;  %v473_v35 = vunpack.c.0.s8 %v457_v27  ;;  %v477_v36 = vunpack.c.1.s8 %v457_v27  ;;  %v536_v43 = vcvt.s32.f32 %v472_v31  ;;  %v540_v44 = vcvt.s32.f32 %v476_v32  ;;  %v1911_v46 = vld [vmem:[%s2762_s19 + $0x40] sm:$0xff] }
  0xc3   : > { %1003 = vmatpush.bf16.msra.mxu2 %v1924_v11  ;;  %v1920_v39 = vld [vmem:[%s2762_s19 + $0x88] sm:$0xff]  ;;  %v535_v41 = vcvt.s32.f32 %v471_v29  ;;  %v539_v42 = vcvt.s32.f32 %v475_v30  ;;  %v538_v49 = vcvt.s32.f32 %v474_v37  ;;  %v542_v50 = vcvt.s32.f32 %v478_v38  ;;  %v1919_v51 = vld [vmem:[%s2762_s19 + $0x80] sm:$0xff] }
  0xc4   : > { %1052 = vmatpush.bf16.msra.mxu3 %v1932_v12  ;;  %v1928_v40 = vld [vmem:[%s2762_s19 + $0xc8] sm:$0xff]  ;;  %v537_v47 = vcvt.s32.f32 %v473_v35  ;;  %v541_v48 = vcvt.s32.f32 %v477_v36  ;;  %v1927_v52 = vld [vmem:[%s2762_s19 + $0xc0] sm:$0xff]  ;;  %v600_v54 = vpack.c.bf16 %v540_v44, %v536_v43  ;;  %v479_v57 = vunpack.c.2.s8 %v455_v24 }
  0xc5   : > { %906 = vmatpush.bf16.msra.mxu0 %v1907_v13  ;;  %v599_v53 = vpack.c.bf16 %v539_v42, %v535_v41  ;;  %v602_v56 = vpack.c.bf16 %v542_v50, %v538_v49  ;;  %v483_v58 = vunpack.c.3.s8 %v455_v24  ;;  %v481_v61 = vunpack.c.2.s8 %v457_v27  ;;  %v459_v13 = vld [vmem:[%s2755_s12 + $0x20] sm:$0xff] }
  0xc6   : > { %955 = vmatpush.bf16.msra.mxu1 %v1915_v14  ;;  %v601_v55 = vpack.c.bf16 %v541_v48, %v537_v47  ;;  %v485_v62 = vunpack.c.3.s8 %v457_v27  ;;  %v482_v63 = vunpack.c.2.s8 %v458_v28  ;;  %v486_v0 = vunpack.c.3.s8 %v458_v28  ;;  %v460_v14 = vld [vmem:[%s2755_s12 + $0x28] sm:$0xff] }
  0xc7   : > { %1004 = vmatpush.bf16.msra.mxu2 %v1923_v15  ;;  %v543_v1 = vcvt.s32.f32 %v479_v57  ;;  %v547_v2 = vcvt.s32.f32 %v483_v58  ;;  %v544_v3 = vcvt.s32.f32 %v480_v59  ;;  %v548_v4 = vcvt.s32.f32 %v484_v60  ;;  %v461_v15 = vld [vmem:[%s2755_s12 + $0x30] sm:$0xff]  ;;  %v463_v57 = vld [vmem:[%s2755_s12 + $0x40] sm:$0xff]  ;;  %v464_v58 = vld [vmem:[%s2755_s12 + $0x48] sm:$0xff] }
  0xc8   : > { %1053 = vmatpush.bf16.msra.mxu3 %v1931_v16  ;;  %v545_v5 = vcvt.s32.f32 %v481_v61  ;;  %v549_v6 = vcvt.s32.f32 %v485_v62  ;;  %v546_v7 = vcvt.s32.f32 %v482_v63  ;;  %v550_v8 = vcvt.s32.f32 %v486_v0  ;;  %v462_v16 = vld [vmem:[%s2755_s12 + $0x38] sm:$0xff]  ;;  %v465_v59 = vld [vmem:[%s2755_s12 + $0x50] sm:$0xff] }
  0xc9   : > { %907 = vmatpush.bf16.msra.mxu0 %v1906_v17  ;;  %v603_v9 = vpack.c.bf16 %v547_v2, %v543_v1  ;;  %v604_v10 = vpack.c.bf16 %v548_v4, %v544_v3  ;;  %v487_v17 = vunpack.c.0.s8 %v459_v13  ;;  %v494_v24 = vunpack.c.1.s8 %v462_v16  ;;  %v466_v60 = vld [vmem:[%s2755_s12 + $0x58] sm:$0xff] }
  0xca   : > { %956 = vmatpush.bf16.msra.mxu1 %v1914_v18  ;;  %v605_v11 = vpack.c.bf16 %v549_v6, %v545_v5  ;;  %v606_v12 = vpack.c.bf16 %v550_v8, %v546_v7  ;;  %v491_v18 = vunpack.c.1.s8 %v459_v13  ;;  %v495_v37 = vunpack.c.2.s8 %v459_v13 }
  0xcb   : > { %1005 = vmatpush.bf16.msra.mxu2 %v1922_v19  ;;  %v488_v19 = vunpack.c.0.s8 %v460_v14  ;;  %v551_v25 = vcvt.s32.f32 %v487_v17  ;;  %v558_v32 = vcvt.s32.f32 %v494_v24  ;;  %v499_v38 = vunpack.c.3.s8 %v459_v13 }
  0xcc   : > { %1054 = vmatpush.bf16.msra.mxu3 %v1930_v20  ;;  %v492_v20 = vunpack.c.1.s8 %v460_v14  ;;  %v497_v41 = vunpack.c.2.s8 %v461_v15  ;;  %v501_v42 = vunpack.c.3.s8 %v461_v15  ;;  %v498_v43 = vunpack.c.2.s8 %v462_v16 }
  0xcd   : > { %908 = vmatpush.bf16.msra.mxu0 %v1905_v21  ;;  %v489_v21 = vunpack.c.0.s8 %v461_v15  ;;  %v552_v27 = vcvt.s32.f32 %v488_v19  ;;  %v502_v44 = vunpack.c.3.s8 %v462_v16  ;;  %v503_v61 = vunpack.c.0.s8 %v463_v57 }
  0xce   : > { %957 = vmatpush.bf16.msra.mxu1 %v1913_v22  ;;  %v493_v22 = vunpack.c.1.s8 %v461_v15  ;;  %v556_v28 = vcvt.s32.f32 %v492_v20  ;;  %v561_v49 = vcvt.s32.f32 %v497_v41  ;;  %v565_v50 = vcvt.s32.f32 %v501_v42 }
  0xcf   : > { %1006 = vmatpush.bf16.msra.mxu2 %v1921_v23  ;;  %v490_v23 = vunpack.c.0.s8 %v462_v16  ;;  %v553_v29 = vcvt.s32.f32 %v489_v21  ;;  %v507_v62 = vunpack.c.1.s8 %v463_v57  ;;  %v504_v63 = vunpack.c.0.s8 %v464_v58 }
  0xd0   : > { %1055 = vmatpush.bf16.msra.mxu3 %v1929_v26  ;;  %v555_v26 = vcvt.s32.f32 %v491_v18  ;;  %v557_v30 = vcvt.s32.f32 %v493_v22  ;;  %v508_v0 = vunpack.c.1.s8 %v464_v58  ;;  %v505_v1 = vunpack.c.0.s8 %v465_v59 }
  0xd1   : > { %909 = vmatpush.bf16.msra.mxu0 %v1904_v33  ;;  %v554_v31 = vcvt.s32.f32 %v490_v23  ;;  %v509_v2 = vunpack.c.1.s8 %v465_v59  ;;  %v506_v3 = vunpack.c.0.s8 %v466_v60  ;;  %v510_v4 = vunpack.c.1.s8 %v466_v60 }
  0xd2   : > { %958 = vmatpush.bf16.msra.mxu1 %v1912_v34  ;;  %v607_v33 = vpack.c.bf16 %v555_v26, %v551_v25  ;;  %v608_v34 = vpack.c.bf16 %v556_v28, %v552_v27  ;;  %v609_v35 = vpack.c.bf16 %v557_v30, %v553_v29  ;;  %v567_v5 = vcvt.s32.f32 %v503_v61 }
  0xd3   : > { %1007 = vmatpush.bf16.msra.mxu2 %v1920_v39  ;;  %v610_v36 = vpack.c.bf16 %v558_v32, %v554_v31  ;;  %v496_v39 = vunpack.c.2.s8 %v460_v14  ;;  %v571_v6 = vcvt.s32.f32 %v507_v62  ;;  %v568_v7 = vcvt.s32.f32 %v504_v63 }
  0xd4   : > { %1056 = vmatpush.bf16.msra.mxu3 %v1928_v40  ;;  %v500_v40 = vunpack.c.3.s8 %v460_v14  ;;  %v572_v8 = vcvt.s32.f32 %v508_v0  ;;  %v511_v17 = vunpack.c.2.s8 %v463_v57  ;;  %v515_v18 = vunpack.c.3.s8 %v463_v57 }
  0xd5   : > { %910 = vmatpush.bf16.msra.mxu0 %v1903_v45  ;;  %v559_v45 = vcvt.s32.f32 %v495_v37  ;;  %v560_v47 = vcvt.s32.f32 %v496_v39  ;;  %v615_v13 = vpack.c.bf16 %v571_v6, %v567_v5  ;;  %v512_v19 = vunpack.c.2.s8 %v464_v58  ;;  %v467_v37 = vld [vmem:[%s2755_s12 + $0x60] sm:$0xff]  ;;  %v469_v39 = vld [vmem:[%s2755_s12 + $0x70] sm:$0xff] }
  0xd6   : > { %959 = vmatpush.bf16.msra.mxu1 %v1911_v46  ;;  %v563_v46 = vcvt.s32.f32 %v499_v38  ;;  %v564_v48 = vcvt.s32.f32 %v500_v40  ;;  %v616_v14 = vpack.c.bf16 %v572_v8, %v568_v7  ;;  %v516_v20 = vunpack.c.3.s8 %v464_v58  ;;  %v468_v38 = vld [vmem:[%s2755_s12 + $0x68] sm:$0xff]  ;;  %v470_v40 = vld [vmem:[%s2755_s12 + $0x78] sm:$0xff] }
  0xd7   : > { %1008 = vmatpush.bf16.msra.mxu2 %v1919_v51  ;;  %v562_v51 = vcvt.s32.f32 %v498_v43  ;;  %v513_v21 = vunpack.c.2.s8 %v465_v59  ;;  %v517_v22 = vunpack.c.3.s8 %v465_v59  ;;  %v514_v23 = vunpack.c.2.s8 %v466_v60 }
  0xd8   : > { %1057 = vmatpush.bf16.msra.mxu3 %v1927_v52  ;;  %911 = vmatmul.bf16.vlgmr.msra.gmra.mxu0 %v599_v53  ;;  %v566_v52 = vcvt.s32.f32 %v502_v44  ;;  %v611_v53 = vpack.c.bf16 %v563_v46, %v559_v45  ;;  %v518_v24 = vunpack.c.3.s8 %v466_v60  ;;  %v575_v25 = vcvt.s32.f32 %v511_v17 }
  0xd9   : > { %960 = vmatmul.bf16.vlgmr.msra.gmra.mxu1 %v600_v54  ;;  %v612_v54 = vpack.c.bf16 %v564_v48, %v560_v47  ;;  %v579_v26 = vcvt.s32.f32 %v515_v18  ;;  %v576_v27 = vcvt.s32.f32 %v512_v19  ;;  %v580_v28 = vcvt.s32.f32 %v516_v20 }
  0xda   : > { %1009 = vmatmul.bf16.vlgmr.msra.gmra.mxu2 %v601_v55  ;;  %v613_v55 = vpack.c.bf16 %v565_v50, %v561_v49  ;;  %v577_v29 = vcvt.s32.f32 %v513_v21  ;;  %v581_v30 = vcvt.s32.f32 %v517_v22  ;;  %v578_v31 = vcvt.s32.f32 %v514_v23 }
  0xdb   : > { %1058 = vmatmul.bf16.vlgmr.msra.gmra.mxu3 %v602_v56  ;;  %v614_v56 = vpack.c.bf16 %v566_v52, %v562_v51  ;;  %v582_v32 = vcvt.s32.f32 %v518_v24  ;;  %v519_v41 = vunpack.c.0.s8 %v467_v37  ;;  %v523_v42 = vunpack.c.1.s8 %v467_v37 }
  0xdc   : > { %v520_v43 = vunpack.c.0.s8 %v468_v38  ;;  %v524_v44 = vunpack.c.1.s8 %v468_v38  ;;  %v521_v45 = vunpack.c.0.s8 %v469_v39  ;;  %v525_v46 = vunpack.c.1.s8 %v469_v39 }
  0xdd   : > { %v522_v47 = vunpack.c.0.s8 %v470_v40  ;;  %v526_v48 = vunpack.c.1.s8 %v470_v40  ;;  %v583_v49 = vcvt.s32.f32 %v519_v41  ;;  %v587_v50 = vcvt.s32.f32 %v523_v42 }
  0xde   : > { %v584_v51 = vcvt.s32.f32 %v520_v43  ;;  %v588_v52 = vcvt.s32.f32 %v524_v44  ;;  %v527_v61 = vunpack.c.2.s8 %v467_v37  ;;  %v531_v62 = vunpack.c.3.s8 %v467_v37  ;;  %v633_v43 = vld [vmem:[#allocation2 + $0x58] sm:$0xff] }
  0xdf   : > { %v623_v57 = vpack.c.bf16 %v587_v50, %v583_v49  ;;  %v528_v63 = vunpack.c.2.s8 %v468_v38  ;;  %v532_v0 = vunpack.c.3.s8 %v468_v38 }
  0xe0   : > { %v624_v58 = vpack.c.bf16 %v588_v52, %v584_v51  ;;  %v591_v5 = vcvt.s32.f32 %v527_v61  ;;  %v595_v6 = vcvt.s32.f32 %v531_v62  ;;  %v634_v52 = vld [vmem:[#allocation2 + $0x18] sm:$0xff]  ;;  %v635_v61 = vld [vmem:[#allocation2 + $0x50] sm:$0xff] }
  0xe1   : > { %v592_v7 = vcvt.s32.f32 %v528_v63  ;;  %v596_v8 = vcvt.s32.f32 %v532_v0 }
  0xe8   : > { %916 = vmatmul.bf16.gmra.mxu0 %v603_v9  ;;  %v569_v9 = vcvt.s32.f32 %v505_v1  ;;  %v529_v1 = vunpack.c.2.s8 %v469_v39 }
  0xe9   : > { %965 = vmatmul.bf16.gmra.mxu1 %v604_v10  ;;  %v573_v10 = vcvt.s32.f32 %v509_v2  ;;  %v533_v2 = vunpack.c.3.s8 %v469_v39 }
  0xea   : > { %1014 = vmatmul.bf16.gmra.mxu2 %v605_v11  ;;  %v570_v11 = vcvt.s32.f32 %v506_v3  ;;  %v530_v3 = vunpack.c.2.s8 %v470_v40 }
  0xeb   : > { %1063 = vmatmul.bf16.gmra.mxu3 %v606_v12  ;;  %v574_v12 = vcvt.s32.f32 %v510_v4  ;;  %v617_v15 = vpack.c.bf16 %v573_v10, %v569_v9  ;;  %v534_v4 = vunpack.c.3.s8 %v470_v40  ;;  %v593_v9 = vcvt.s32.f32 %v529_v1 }
  0xec   : > { %v597_v10 = vcvt.s32.f32 %v533_v2 }
  0xed   : > { %v618_v16 = vpack.c.bf16 %v574_v12, %v570_v11  ;;  %v594_v11 = vcvt.s32.f32 %v530_v3  ;;  %v598_v12 = vcvt.s32.f32 %v534_v4 }
  0xf8   : > { %921 = vmatmul.bf16.gmra.mxu0 %v607_v33  ;;  %v619_v33 = vpack.c.bf16 %v579_v26, %v575_v25  ;;  %v631_v25 = vld [vmem:[#allocation2 + $0x30] sm:$0xff] }
  0xf9   : > { %970 = vmatmul.bf16.gmra.mxu1 %v608_v34  ;;  %v620_v34 = vpack.c.bf16 %v580_v28, %v576_v27 }
  0xfa   : > { %1019 = vmatmul.bf16.gmra.mxu2 %v609_v35  ;;  %v621_v35 = vpack.c.bf16 %v581_v30, %v577_v29 }
  0xfb   : > { %1068 = vmatmul.bf16.gmra.mxu3 %v610_v36  ;;  %v622_v36 = vpack.c.bf16 %v582_v32, %v578_v31 }
 0x108   : > { %926 = vmatmul.bf16.gmra.mxu0 %v611_v53  ;;  %v585_v53 = vcvt.s32.f32 %v521_v45 }
 0x109   : > { %975 = vmatmul.bf16.gmra.mxu1 %v612_v54  ;;  %v589_v54 = vcvt.s32.f32 %v525_v46 }
 0x10a   : > { %1024 = vmatmul.bf16.gmra.mxu2 %v613_v55  ;;  %v586_v55 = vcvt.s32.f32 %v522_v47 }
 0x10b   : > { %1073 = vmatmul.bf16.gmra.mxu3 %v614_v56  ;;  %v590_v56 = vcvt.s32.f32 %v526_v48  ;;  %v625_v59 = vpack.c.bf16 %v589_v54, %v585_v53 }
 0x10d   : > { %v626_v60 = vpack.c.bf16 %v590_v56, %v586_v55 }
 0x118   : > { %931 = vmatmul.bf16.gmra.mxu0 %v615_v13  ;;  %v627_v13 = vpack.c.bf16 %v595_v6, %v591_v5  ;;  %v636_v6 = vld [vmem:[#allocation2 + $0x68] sm:$0xff] }
 0x119   : > { %980 = vmatmul.bf16.gmra.mxu1 %v616_v14  ;;  %v628_v14 = vpack.c.bf16 %v596_v8, %v592_v7 }
 0x11a   : > { %1029 = vmatmul.bf16.gmra.mxu2 %v617_v15  ;;  %v629_v15 = vpack.c.bf16 %v597_v10, %v593_v9 }
 0x11b   : > { %1078 = vmatmul.bf16.gmra.mxu3 %v618_v16  ;;  %v630_v16 = vpack.c.bf16 %v598_v12, %v594_v11 }
 0x128   : > { %936 = vmatmul.bf16.gmra.mxu0 %v619_v33 }
 0x129   : > { %985 = vmatmul.bf16.gmra.mxu1 %v620_v34  ;;  %v632_v34 = vld [vmem:[#allocation2] sm:$0xff] }
 0x12a   : > { %1034 = vmatmul.bf16.gmra.mxu2 %v621_v35 }
 0x12b   : > { %1083 = vmatmul.bf16.gmra.mxu3 %v622_v36 }
 0x138   : > { %941 = vmatmul.bf16.gmra.mxu0 %v623_v57 }
 0x139   : > { %990 = vmatmul.bf16.gmra.mxu1 %v624_v58 }
 0x13a   : > { %1039 = vmatmul.bf16.gmra.mxu2 %v625_v59 }
 0x13b   : > { %1088 = vmatmul.bf16.gmra.mxu3 %v626_v60 }
 0x148   : > { %946 = vmatmul.bf16.gmra.mxu0 %v627_v13 }
 0x149   : > { %995 = vmatmul.bf16.gmra.mxu1 %v628_v14 }
 0x14a   : > { %1044 = vmatmul.bf16.gmra.mxu2 %v629_v15  ;;  %v637_v15 = vld [vmem:[#allocation2 + $0x8] sm:$0xff] }
 0x14b   : > { %1093 = vmatmul.bf16.gmra.mxu3 %v630_v16 }
 0x155   : > { %v912_v17 = vpop.f32.mrf.mxu0 }
 0x156   : > { %v961_v18 = vpop.f32.mrf.mxu1 }
 0x157   : > { %v962_v19 = vadd.f32 %v961_v18, %v912_v17 }
 0x15d   : > { %v1010_v20 = vpop.f32.mrf.mxu2  ;;  %v914_v23 = vpop.f32.mrf.mxu0 }
 0x15e   : > { %v1059_v21 = vpop.f32.mrf.mxu3  ;;  %v1011_v22 = vadd.f32 %v1010_v20, %v962_v19  ;;  %v963_v24 = vpop.f32.mrf.mxu1 }
 0x15f   : > { %v964_v28 = vadd.f32 %v963_v24, %v914_v23  ;;  %v638_v24 = vld [vmem:[#allocation2 + $0x48] sm:$0xff] }
 0x160   : > { %v1060_v26 = vadd.f32 %v1059_v21, %v1011_v22 }
 0x162   : > { %v1099_v27 = vadd.f32 %v1060_v26, %v631_v25 }
 0x164   : > { %1115 = vst [vmem:[#allocation2 + $0x30] sm:$0xff] %v1099_v27 }
 0x165   : > { %v1012_v29 = vpop.f32.mrf.mxu2  ;;  %v917_v32 = vpop.f32.mrf.mxu0 }
 0x166   : > { %v1061_v30 = vpop.f32.mrf.mxu3  ;;  %v1013_v31 = vadd.f32 %v1012_v29, %v964_v28  ;;  %v966_v33 = vpop.f32.mrf.mxu1 }
 0x167   : > { %v967_v37 = vadd.f32 %v966_v33, %v917_v32  ;;  %v639_v33 = vld [vmem:[#allocation2 + $0x40] sm:$0xff] }
 0x168   : > { %v1062_v35 = vadd.f32 %v1061_v30, %v1013_v31 }
 0x16a   : > { %v1100_v36 = vadd.f32 %v1062_v35, %v632_v34 }
 0x16c   : > { %1116 = vst [vmem:[#allocation2] sm:$0xff] %v1100_v36 }
 0x16d   : > { %v1015_v38 = vpop.f32.mrf.mxu2  ;;  %v919_v41 = vpop.f32.mrf.mxu0 }
 0x16e   : > { %v1064_v39 = vpop.f32.mrf.mxu3  ;;  %v1016_v40 = vadd.f32 %v1015_v38, %v967_v37  ;;  %v968_v42 = vpop.f32.mrf.mxu1 }
 0x16f   : > { %v969_v46 = vadd.f32 %v968_v42, %v919_v41  ;;  %v640_v42 = vld [vmem:[#allocation2 + $0x20] sm:$0xff] }
 0x170   : > { %v1065_v44 = vadd.f32 %v1064_v39, %v1016_v40 }
 0x172   : > { %v1101_v45 = vadd.f32 %v1065_v44, %v633_v43 }
 0x174   : > { %1117 = vst [vmem:[#allocation2 + $0x58] sm:$0xff] %v1101_v45 }
 0x175   : > { %v1017_v47 = vpop.f32.mrf.mxu2  ;;  %v922_v50 = vpop.f32.mrf.mxu0 }
 0x176   : > { %v1066_v48 = vpop.f32.mrf.mxu3  ;;  %v1018_v49 = vadd.f32 %v1017_v47, %v969_v46  ;;  %v971_v51 = vpop.f32.mrf.mxu1 }
 0x177   : > { %v972_v55 = vadd.f32 %v971_v51, %v922_v50  ;;  %v641_v51 = vld [vmem:[#allocation2 + $0x10] sm:$0xff] }
 0x178   : > { %v1067_v53 = vadd.f32 %v1066_v48, %v1018_v49 }
 0x17a   : > { %v1102_v54 = vadd.f32 %v1067_v53, %v634_v52 }
 0x17c   : > { %1118 = vst [vmem:[#allocation2 + $0x18] sm:$0xff] %v1102_v54 }
 0x17d   : > { %v1020_v56 = vpop.f32.mrf.mxu2  ;;  %v924_v59 = vpop.f32.mrf.mxu0 }
 0x17e   : > { %v1069_v57 = vpop.f32.mrf.mxu3  ;;  %v1021_v58 = vadd.f32 %v1020_v56, %v972_v55  ;;  %v973_v60 = vpop.f32.mrf.mxu1 }
 0x17f   : > { %v974_v0 = vadd.f32 %v973_v60, %v924_v59  ;;  %v642_v60 = vld [vmem:[#allocation2 + $0x38] sm:$0xff] }
 0x180   : > { %v1070_v62 = vadd.f32 %v1069_v57, %v1021_v58 }
 0x182   : > { %v1103_v63 = vadd.f32 %v1070_v62, %v635_v61 }
 0x184   : > { %1119 = vst [vmem:[#allocation2 + $0x50] sm:$0xff] %v1103_v63 }
 0x185   : > { %v1022_v1 = vpop.f32.mrf.mxu2  ;;  %v927_v4 = vpop.f32.mrf.mxu0 }
 0x186   : > { %v1071_v2 = vpop.f32.mrf.mxu3  ;;  %v1023_v3 = vadd.f32 %v1022_v1, %v974_v0  ;;  %v976_v5 = vpop.f32.mrf.mxu1 }
 0x187   : > { %v977_v9 = vadd.f32 %v976_v5, %v927_v4  ;;  %v643_v5 = vld [vmem:[#allocation2 + $0x60] sm:$0xff] }
 0x188   : > { %v1072_v7 = vadd.f32 %v1071_v2, %v1023_v3 }
 0x18a   : > { %v1104_v8 = vadd.f32 %v1072_v7, %v636_v6 }
 0x18c   : > { %1120 = vst [vmem:[#allocation2 + $0x68] sm:$0xff] %v1104_v8 }
 0x18d   : > { %v1025_v10 = vpop.f32.mrf.mxu2  ;;  %v929_v13 = vpop.f32.mrf.mxu0 }
 0x18e   : > { %v1074_v11 = vpop.f32.mrf.mxu3  ;;  %v1026_v12 = vadd.f32 %v1025_v10, %v977_v9  ;;  %v978_v14 = vpop.f32.mrf.mxu1 }
 0x18f   : > { %v979_v18 = vadd.f32 %v978_v14, %v929_v13 }
 0x190   : > { %v1075_v16 = vadd.f32 %v1074_v11, %v1026_v12  ;;  %v644_v12 = vld [vmem:[#allocation2 + $0x70] sm:$0xff] }
 0x192   : > { %v1105_v17 = vadd.f32 %v1075_v16, %v637_v15 }
 0x194   : > { %1121 = vst [vmem:[#allocation2 + $0x8] sm:$0xff] %v1105_v17 }
 0x195   : > { %v1027_v19 = vpop.f32.mrf.mxu2  ;;  %v932_v22 = vpop.f32.mrf.mxu0 }
 0x196   : > { %v1076_v20 = vpop.f32.mrf.mxu3  ;;  %v1028_v21 = vadd.f32 %v1027_v19, %v979_v18  ;;  %v981_v23 = vpop.f32.mrf.mxu1 }
 0x197   : > { %v982_v27 = vadd.f32 %v981_v23, %v932_v22 }
 0x198   : > { %v1077_v25 = vadd.f32 %v1076_v20, %v1028_v21  ;;  %v645_v21 = vld [vmem:[#allocation2 + $0x78] sm:$0xff] }
 0x19a   : > { %v1106_v26 = vadd.f32 %v1077_v25, %v638_v24 }
 0x19c   : > { %1122 = vst [vmem:[#allocation2 + $0x48] sm:$0xff] %v1106_v26 }
 0x19d   : > { %v1030_v28 = vpop.f32.mrf.mxu2  ;;  %v934_v31 = vpop.f32.mrf.mxu0 }
 0x19e   : > { %v1079_v29 = vpop.f32.mrf.mxu3  ;;  %v1031_v30 = vadd.f32 %v1030_v28, %v982_v27  ;;  %v983_v32 = vpop.f32.mrf.mxu1 }
 0x19f   : > { %v984_v36 = vadd.f32 %v983_v32, %v934_v31 }
 0x1a0   : > { %v1080_v34 = vadd.f32 %v1079_v29, %v1031_v30  ;;  %v646_v29 = vld [vmem:[#allocation2 + $0x28] sm:$0xff] }
 0x1a2   : > { %v1107_v35 = vadd.f32 %v1080_v34, %v639_v33 }
 0x1a4   : > { %1123 = vst [vmem:[#allocation2 + $0x40] sm:$0xff] %v1107_v35 }
 0x1a5   : > { %v1032_v37 = vpop.f32.mrf.mxu2  ;;  %v937_v40 = vpop.f32.mrf.mxu0 }
 0x1a6   : > { %v1081_v38 = vpop.f32.mrf.mxu3  ;;  %v1033_v39 = vadd.f32 %v1032_v37, %v984_v36  ;;  %v986_v41 = vpop.f32.mrf.mxu1 }
 0x1a7   : > { %v987_v45 = vadd.f32 %v986_v41, %v937_v40 }
 0x1a8   : > { %v1082_v43 = vadd.f32 %v1081_v38, %v1033_v39 }
 0x1aa   : > { %v1108_v44 = vadd.f32 %v1082_v43, %v640_v42 }
 0x1ac   : > { %1124 = vst [vmem:[#allocation2 + $0x20] sm:$0xff] %v1108_v44 }
 0x1ad   : > { %v1035_v46 = vpop.f32.mrf.mxu2  ;;  %v939_v49 = vpop.f32.mrf.mxu0 }
 0x1ae   : > { %v1084_v47 = vpop.f32.mrf.mxu3  ;;  %v1036_v48 = vadd.f32 %v1035_v46, %v987_v45  ;;  %v988_v50 = vpop.f32.mrf.mxu1 }
 0x1af   : > { %v989_v54 = vadd.f32 %v988_v50, %v939_v49 }
 0x1b0   : > { %v1085_v52 = vadd.f32 %v1084_v47, %v1036_v48 }
 0x1b2   : > { %v1109_v53 = vadd.f32 %v1085_v52, %v641_v51 }
 0x1b4   : > { %1125 = vst [vmem:[#allocation2 + $0x10] sm:$0xff] %v1109_v53 }
 0x1b5   : > { %v1037_v55 = vpop.f32.mrf.mxu2  ;;  %v942_v58 = vpop.f32.mrf.mxu0 }
 0x1b6   : > { %v1086_v56 = vpop.f32.mrf.mxu3  ;;  %v1038_v57 = vadd.f32 %v1037_v55, %v989_v54  ;;  %v991_v59 = vpop.f32.mrf.mxu1 }
 0x1b7   : > { %v992_v63 = vadd.f32 %v991_v59, %v942_v58 }
 0x1b8   : > { %v1087_v61 = vadd.f32 %v1086_v56, %v1038_v57 }
 0x1ba   : > { %v1110_v62 = vadd.f32 %v1087_v61, %v642_v60 }
 0x1bc   : > { %1126 = vst [vmem:[#allocation2 + $0x38] sm:$0xff] %v1110_v62 }
 0x1bd   : > { %v1040_v0 = vpop.f32.mrf.mxu2  ;;  %v944_v3 = vpop.f32.mrf.mxu0 }
 0x1be   : > { %v1089_v1 = vpop.f32.mrf.mxu3  ;;  %v1041_v2 = vadd.f32 %v1040_v0, %v992_v63  ;;  %v993_v4 = vpop.f32.mrf.mxu1 }
 0x1bf   : > { %v994_v8 = vadd.f32 %v993_v4, %v944_v3 }
 0x1c0   : > { %v1090_v6 = vadd.f32 %v1089_v1, %v1041_v2 }
 0x1c2   : > { %v1111_v7 = vadd.f32 %v1090_v6, %v643_v5 }
 0x1c4   : > { %1127 = vst [vmem:[#allocation2 + $0x60] sm:$0xff] %v1111_v7 }
 0x1c5   : > { %v1042_v9 = vpop.f32.mrf.mxu2  ;;  %v947_v13 = vpop.f32.mrf.mxu0 }
 0x1c6   : > { %v1091_v10 = vpop.f32.mrf.mxu3  ;;  %v1043_v11 = vadd.f32 %v1042_v9, %v994_v8  ;;  %v996_v14 = vpop.f32.mrf.mxu1 }
 0x1c7   : > { %v997_v17 = vadd.f32 %v996_v14, %v947_v13 }
 0x1c8   : > { %v1092_v15 = vadd.f32 %v1091_v10, %v1043_v11 }
 0x1ca   : > { %v1112_v16 = vadd.f32 %v1092_v15, %v644_v12 }
 0x1cc   : > { %1128 = vst [vmem:[#allocation2 + $0x70] sm:$0xff] %v1112_v16 }
 0x1cd   : > { %v1045_v18 = vpop.f32.mrf.mxu2  ;;  %v949_v23 = vpop.f32.mrf.mxu0 }
 0x1ce   : > { %v1094_v19 = vpop.f32.mrf.mxu3  ;;  %v1046_v20 = vadd.f32 %v1045_v18, %v997_v17  ;;  %v998_v24 = vpop.f32.mrf.mxu1 }
 0x1cf   : > { %v999_v26 = vadd.f32 %v998_v24, %v949_v23 }
 0x1d0   : > { %v1095_v22 = vadd.f32 %v1094_v19, %v1046_v20 }
 0x1d2   : > { %v1113_v25 = vadd.f32 %v1095_v22, %v645_v21 }
 0x1d4   : > { %1129 = vst [vmem:[#allocation2 + $0x78] sm:$0xff] %v1113_v25 }
 0x1d5   : > { %v1047_v27 = vpop.f32.mrf.mxu2 }
 0x1d6   : > { %v1048_v28 = vadd.f32 %v1047_v27, %v999_v26  ;;  %v1096_v30 = vpop.f32.mrf.mxu3 }
 0x1d8   : > { %v1097_v31 = vadd.f32 %v1096_v30, %v1048_v28 }
 0x1da   : > { %v1114_v32 = vadd.f32 %v1097_v31, %v646_v29 }
 0x1dc   : > { %1130 = vst [vmem:[#allocation2 + $0x28] sm:$0xff] %v1114_v32 }
 0x1dd PF: > { %s3057_s12 = sld [smem:[#allocation25_spill]] }
 0x1e3   : > { %p1831_p7 = scmp.ne.s32.totalorder %s3057_s12, 1 }
 0x1e4   : > { %s3058_s16 = sld [smem:[#allocation36_spill]] (!%p1831_p7) }
 0x1e5   : > { %1134 = sbr.rel (%p1831_p7) target bundleno = 688 (0x2b0), region = 64  ;;  %s3059_s12 = sld [smem:[#allocation37_spill]] (!%p1831_p7) }
 0x1ea   : > { %v1151_v33 = vld [vmem:[%s2780_s6] sm:$0xff]  ;;  %v1950_v34 = vld [vmem:[%s3058_s16 + $0x38] sm:$0xff]  ;;  %v2441_v35 = vmov 0   ;;  %v1153_v36 = vld [vmem:[%s2780_s6 + $0x10] sm:$0xff] }
 0x1eb   : > { %2178 = vset.pattern.permute.xlu0 %v2441_v35  ;;  %2179 = vset.pattern.permute.xlu1 %v2441_v35  ;;  %v1949_v37 = vld [vmem:[%s3058_s16 + $0x30] sm:$0xff]  ;;  %v1155_v38 = vld [vmem:[%s2780_s6 + $0x20] sm:$0xff]  ;;  %v1948_v39 = vld [vmem:[%s3058_s16 + $0x28] sm:$0xff] }
 0x1ec   : > { %1169 = vperm.xlu0 %2178, %v1151_v33   ;;  %1411 = vmatpush.bf16.msra.mxu0 %v1950_v34  ;;  %v1152_v40 = vld [vmem:[%s2780_s6 + $0x8] sm:$0xff]  ;;  %v1154_v41 = vld [vmem:[%s2780_s6 + $0x18] sm:$0xff]  ;;  %v1947_v42 = vld [vmem:[%s3058_s16 + $0x20] sm:$0xff] }
 0x1ed   : > { %1999 = vmatpush.bf16.msra.mxu1 %v1950_v34  ;;  %2000 = vmatpush.bf16.msra.mxu2 %v1950_v34  ;;  %v1156_v43 = vld [vmem:[%s2780_s6 + $0x28] sm:$0xff]  ;;  %v1946_v44 = vld [vmem:[%s3058_s16 + $0x18] sm:$0xff]  ;;  %v1157_v45 = vld [vmem:[%s2780_s6 + $0x30] sm:$0xff] }
 0x1ee   : > { %2001 = vmatpush.bf16.msra.mxu3 %v1950_v34  ;;  %1179 = vperm.xlu1 %2179, %v1153_v36   ;;  %v1158_v46 = vld [vmem:[%s2780_s6 + $0x38] sm:$0xff]  ;;  %v1945_v47 = vld [vmem:[%s3058_s16 + $0x10] sm:$0xff]  ;;  %v1159_v48 = vld [vmem:[%s2780_s6 + $0x40] sm:$0xff] }
 0x1ef   : > { %2180 = vset.pattern.permute.xlu2 %v2441_v35  ;;  %v1944_v49 = vld [vmem:[%s3058_s16 + $0x8] sm:$0xff]  ;;  %v1161_v51 = vld [vmem:[%s2780_s6 + $0x50] sm:$0xff]  ;;  %v1943_v52 = vld [vmem:[%s3058_s16] sm:$0xff] }
 0x1f0   : > { %1412 = vmatpush.bf16.msra.mxu0 %v1949_v37  ;;  %1189 = vperm.xlu2 %2180, %v1155_v38   ;;  %v1160_v50 = vld [vmem:[%s2780_s6 + $0x48] sm:$0xff]  ;;  %v1162_v53 = vld [vmem:[%s2780_s6 + $0x58] sm:$0xff]  ;;  %v1935_v54 = vld [vmem:[%s2775_s24] sm:$0xff] }
 0x1f1   : > { %2002 = vmatpush.bf16.msra.mxu1 %v1949_v37  ;;  %2003 = vmatpush.bf16.msra.mxu2 %v1949_v37  ;;  %v1937_v55 = vld [vmem:[%s2775_s24 + $0x10] sm:$0xff]  ;;  %v1939_v56 = vld [vmem:[%s2775_s24 + $0x20] sm:$0xff]  ;;  %v1164_v59 = vld [vmem:[%s2780_s6 + $0x68] sm:$0xff] }
 0x1f2   : > { %2004 = vmatpush.bf16.msra.mxu3 %v1949_v37  ;;  %v1941_v57 = vld [vmem:[%s2775_s24 + $0x30] sm:$0xff]  ;;  %v1163_v58 = vld [vmem:[%s2780_s6 + $0x60] sm:$0xff]  ;;  %v1166_v61 = vld [vmem:[%s2780_s6 + $0x78] sm:$0xff] }
 0x1f3   : > { %v1165_v60 = vld [vmem:[%s2780_s6 + $0x70] sm:$0xff]  ;;  %v1936_v62 = vld [vmem:[%s2775_s24 + $0x8] sm:$0xff]  ;;  %v1938_v63 = vld [vmem:[%s2775_s24 + $0x18] sm:$0xff] }
 0x1f4   : > { %1174 = vperm.xlu0 %2178, %v1152_v40   ;;  %1413 = vmatpush.bf16.msra.mxu0 %v1948_v39  ;;  %v1940_v0 = vld [vmem:[%s2775_s24 + $0x28] sm:$0xff]  ;;  %v1942_v1 = vld [vmem:[%s2775_s24 + $0x38] sm:$0xff]  ;;  %v1135_v12 = vld [vmem:[#allocation2 + $0x30] sm:$0xff] }
 0x1f5   : > { %2005 = vmatpush.bf16.msra.mxu1 %v1948_v39  ;;  %2006 = vmatpush.bf16.msra.mxu2 %v1948_v39  ;;  %v1139_v13 = vld [vmem:[#allocation2 + $0x50] sm:$0xff]  ;;  %v1136_v14 = vld [vmem:[#allocation2] sm:$0xff]  ;;  %v1140_v17 = vld [vmem:[#allocation2 + $0x68] sm:$0xff] }
 0x1f6   : > { %2007 = vmatpush.bf16.msra.mxu3 %v1948_v39  ;;  %1184 = vperm.xlu1 %2179, %v1154_v41   ;;  %v2897_v18 = vld [vmem:[%s3059_s12] ss:$0 sm:$0xff]  ;;  %v1148_v35 = vld [vmem:[#allocation2 + $0x70] sm:$0xff] }
 0x1f7   : > { %v1143_v24 = vld [vmem:[#allocation2 + $0x40] sm:$0xff] }
 0x1f8   : > { %1414 = vmatpush.bf16.msra.mxu0 %v1947_v42  ;;  %1194 = vperm.xlu2 %2180, %v1156_v43   ;;  %v1147_v27 = vld [vmem:[#allocation2 + $0x60] sm:$0xff] }
 0x1f9   : > { %2008 = vmatpush.bf16.msra.mxu1 %v1947_v42  ;;  %2009 = vmatpush.bf16.msra.mxu2 %v1947_v42  ;;  %v1144_v29 = vld [vmem:[#allocation2 + $0x20] sm:$0xff] }
 0x1fa   : > { %2010 = vmatpush.bf16.msra.mxu3 %v1947_v42 }
 0x1fc   : > { %1199 = vperm.xlu0 %2178, %v1157_v45   ;;  %1415 = vmatpush.bf16.msra.mxu0 %v1946_v44 }
 0x1fd   : > { %2011 = vmatpush.bf16.msra.mxu1 %v1946_v44  ;;  %2012 = vmatpush.bf16.msra.mxu2 %v1946_v44 }
 0x1fe   : > { %2013 = vmatpush.bf16.msra.mxu3 %v1946_v44  ;;  %1204 = vperm.xlu1 %2179, %v1158_v46  }
 0x200   : > { %1416 = vmatpush.bf16.msra.mxu0 %v1945_v47  ;;  %1209 = vperm.xlu2 %2180, %v1159_v48  }
 0x201   : > { %2014 = vmatpush.bf16.msra.mxu1 %v1945_v47  ;;  %2015 = vmatpush.bf16.msra.mxu2 %v1945_v47 }
 0x202   : > { %2016 = vmatpush.bf16.msra.mxu3 %v1945_v47 }
 0x204   : > { %1214 = vperm.xlu0 %2178, %v1160_v50   ;;  %1417 = vmatpush.bf16.msra.mxu0 %v1944_v49 }
 0x205   : > { %2017 = vmatpush.bf16.msra.mxu1 %v1944_v49  ;;  %2018 = vmatpush.bf16.msra.mxu2 %v1944_v49 }
 0x206   : > { %2019 = vmatpush.bf16.msra.mxu3 %v1944_v49  ;;  %1219 = vperm.xlu1 %2179, %v1161_v51  }
 0x208   : > { %1418 = vmatpush.bf16.msra.mxu0 %v1943_v52  ;;  %1224 = vperm.xlu2 %2180, %v1162_v53  }
 0x209   : > { %2020 = vmatpush.bf16.msra.mxu1 %v1943_v52  ;;  %2021 = vmatpush.bf16.msra.mxu2 %v1943_v52 }
 0x20a   : > { %2022 = vmatpush.bf16.msra.mxu3 %v1943_v52 }
 0x20b   : > { %1419 = vmatmul.bf16.vlgmr.msra.gmra.mxu0 %v1935_v54  ;;  %v1137_v54 = vld [vmem:[#allocation2 + $0x58] sm:$0xff] }
 0x20c   : > { %1429 = vmatmul.bf16.vlgmr.msra.gmra.mxu1 %v1937_v55  ;;  %1439 = vmatmul.bf16.vlgmr.msra.gmra.mxu2 %v1939_v56 }
 0x20d   : > { %1449 = vmatmul.bf16.vlgmr.msra.gmra.mxu3 %v1941_v57  ;;  %1229 = vperm.xlu0 %2178, %v1163_v58   ;;  %v1141_v58 = vld [vmem:[#allocation2 + $0x8] sm:$0xff] }
 0x20e   : > { %1234 = vperm.xlu1 %2179, %v1164_v59  }
 0x210   : > { %1239 = vperm.xlu2 %2180, %v1165_v60  }
 0x215   : > { %1244 = vperm.xlu0 %2178, %v1166_v61  }
 0x21b   : > { %1424 = vmatmul.bf16.gmra.mxu0 %v1936_v62  ;;  %v1138_v62 = vld [vmem:[#allocation2 + $0x18] sm:$0xff] }
 0x21c   : > { %1434 = vmatmul.bf16.gmra.mxu1 %v1938_v63  ;;  %1444 = vmatmul.bf16.gmra.mxu2 %v1940_v0 }
 0x21d   : > { %1454 = vmatmul.bf16.gmra.mxu3 %v1942_v1 }
 0x24a   : > { %v1190_v6 = vpop.permute.xlu2 %1189 }
 0x24b   : > { %v1251_v20 = vmul.f32 %v1190_v6, %v1139_v13 }
 0x24d   : > { %v1271_v28 = vadd.f32 %v2897_v18, %v1251_v20  ;;  %v1145_v20 = vld [vmem:[#allocation2 + $0x10] sm:$0xff] }
 0x252   : > { %v1195_v9 = vpop.permute.xlu2 %1194 }
 0x253   : > { %v1252_v23 = vmul.f32 %v1195_v9, %v1140_v17 }
 0x255   : > { %v1272_v39 = vadd.f32 %v2897_v18, %v1252_v23  ;;  %v1149_v23 = vld [vmem:[#allocation2 + $0x78] sm:$0xff] }
 0x25a   : > { %v1210_v21 = vpop.permute.xlu2 %1209 }
 0x25b   : > { %v1255_v34 = vmul.f32 %v1210_v21, %v1143_v24 }
 0x25d   : > { %v1275_v50 = vadd.f32 %v2897_v18, %v1255_v34 }
 0x25e   : > { %v1170_v2 = vpop.permute.xlu0 %1169 }
 0x25f   : > { %v1247_v16 = vmul.f32 %v1170_v2, %v1135_v12 }
 0x260   : > { %v2884_v3 = vpop.permute.xlu1 %1179 }
 0x261   : > { %v1267_v25 = vadd.f32 %v2897_v18, %v1247_v16  ;;  %v1249_v2 = vmul.f32 %v2884_v3, %v1137_v54 }
 0x262   : > { %v1225_v48 = vpop.permute.xlu2 %1224 }
 0x263   : > { %v1269_v3 = vadd.f32 %v2897_v18, %v1249_v2 }
 0x266   : > { %v1175_v4 = vpop.permute.xlu0 %1174 }
 0x267   : > { %v1248_v22 = vmul.f32 %v1175_v4, %v1136_v14  ;;  %v1142_v4 = vld [vmem:[#allocation2 + $0x48] sm:$0xff] }
 0x268   : > { %v2886_v5 = vpop.permute.xlu1 %1184 }
 0x269   : > { %v1268_v33 = vadd.f32 %v2897_v18, %v1248_v22  ;;  %v1250_v14 = vmul.f32 %v2886_v5, %v1138_v62 }
 0x26a   : > { %v1240_v22 = vpop.permute.xlu2 %1239 }
 0x26b   : > { %v1270_v5 = vadd.f32 %v2897_v18, %v1250_v14 }
 0x26e   : > { %v2888_v7 = vpop.permute.xlu0 %1199 }
 0x270   : > { %v2890_v8 = vpop.permute.xlu1 %1204 }
 0x271   : > { %v1254_v17 = vmul.f32 %v2890_v8, %v1142_v4  ;;  %v1150_v8 = vld [vmem:[#allocation2 + $0x28] sm:$0xff] }
 0x276   : > { %v1215_v10 = vpop.permute.xlu0 %1214 }
 0x277   : > { %v1256_v43 = vmul.f32 %v1215_v10, %v1144_v29  ;;  %v1253_v10 = vmul.f32 %v2888_v7, %v1141_v58  ;;  %v1146_v7 = vld [vmem:[#allocation2 + $0x38] sm:$0xff] }
 0x278   : > { %v2892_v11 = vpop.permute.xlu1 %1219 }
 0x279   : > { %v1276_v57 = vadd.f32 %v2897_v18, %v1256_v43  ;;  %v1273_v24 = vadd.f32 %v2897_v18, %v1253_v10 }
 0x27f   : > { %v1230_v26 = vpop.permute.xlu0 %1229 }
 0x280   : > { %v1235_v30 = vpop.permute.xlu1 %1234  ;;  %v1259_v40 = vmul.f32 %v1230_v26, %v1147_v27 }
 0x281   : > { %v1260_v45 = vmul.f32 %v1235_v30, %v1148_v35 }
 0x282   : > { %v1279_v52 = vadd.f32 %v2897_v18, %v1259_v40 }
 0x283   : > { %v1280_v61 = vadd.f32 %v2897_v18, %v1260_v45 }
 0x288   : > { %v1420_v15 = vpop.f32.mrf.mxu0 }
 0x289   : > { %v1430_v19 = vpop.f32.mrf.mxu1  ;;  %v1460_v31 = vadd.f32 %v1420_v15, %v1267_v25  ;;  %v1245_v25 = vpop.permute.xlu0 %1244 }
 0x28a   : > { %v1464_v36 = vadd.f32 %v1430_v19, %v1271_v28  ;;  %v1257_v28 = vmul.f32 %v2892_v11, %v1145_v20 }
 0x28b   : > { %v1476_v46 = vmax.f32 %v1460_v31, 0.0 }
 0x28c   : > { %v1480_v49 = vmax.f32 %v1464_v36, 0.0  ;;  %v1258_v36 = vmul.f32 %v1225_v48, %v1146_v7 }
 0x28f   : > { %v1440_v32 = vpop.f32.mrf.mxu2 }
 0x290   : > { %v1450_v37 = vpop.f32.mrf.mxu3  ;;  %v1422_v38 = vpop.f32.mrf.mxu0  ;;  %v1468_v55 = vadd.f32 %v1440_v32, %v1275_v50  ;;  %v1274_v32 = vadd.f32 %v2897_v18, %v1254_v17 }
 0x291   : > { %v1461_v41 = vadd.f32 %v1422_v38, %v1268_v33  ;;  %v1432_v42 = vpop.f32.mrf.mxu1  ;;  %v1472_v59 = vadd.f32 %v1450_v37, %v1279_v52  ;;  %v1261_v33 = vmul.f32 %v1240_v22, %v1149_v23  ;;  %v1262_v38 = vmul.f32 %v1245_v25, %v1150_v8 }
 0x292   : > { %v1465_v44 = vadd.f32 %v1432_v42, %v1272_v39  ;;  %v1484_v12 = vmax.f32 %v1468_v55, 0.0  ;;  %v1277_v42 = vadd.f32 %v2897_v18, %v1257_v28 }
 0x293   : > { %v1477_v47 = vmax.f32 %v1461_v41, 0.0  ;;  %v1488_v15 = vmax.f32 %v1472_v59, 0.0  ;;  %v1281_v43 = vadd.f32 %v2897_v18, %v1261_v33  ;;  %v1282_v50 = vadd.f32 %v2897_v18, %v1262_v38 }
 0x294   : > { %v1481_v51 = vmax.f32 %v1465_v44, 0.0 }
 0x295   : > { %v1955_v53 = vpack.c.bf16 %v1477_v47, %v1476_v46  ;;  %v1278_v47 = vadd.f32 %v2897_v18, %v1258_v36 }
 0x296   : > { %v1965_v56 = vpack.c.bf16 %v1481_v51, %v1480_v49 }
 0x297   : > { %1956 = vst [vmem:[%s2782_s22] sm:$0xff] %v1955_v53   ;;  %v1442_v60 = vpop.f32.mrf.mxu2 }
 0x298   : > { %1993 = vst [vmem:[%s2782_s22 + $0x10] sm:$0xff] %v1965_v56   ;;  %v1469_v63 = vadd.f32 %v1442_v60, %v1276_v57  ;;  %v1452_v0 = vpop.f32.mrf.mxu3  ;;  %v1425_v1 = vpop.f32.mrf.mxu0 }
 0x299   : > { %v1473_v6 = vadd.f32 %v1452_v0, %v1280_v61  ;;  %v1435_v9 = vpop.f32.mrf.mxu1  ;;  %v1462_v26 = vadd.f32 %v1425_v1, %v1269_v3 }
 0x29a   : > { %v1485_v13 = vmax.f32 %v1469_v63, 0.0  ;;  %v1466_v29 = vadd.f32 %v1435_v9, %v1273_v24 }
 0x29b   : > { %v1489_v16 = vmax.f32 %v1473_v6, 0.0  ;;  %v1478_v39 = vmax.f32 %v1462_v26, 0.0 }
 0x29c   : > { %v1975_v19 = vpack.c.bf16 %v1485_v13, %v1484_v12  ;;  %v1482_v41 = vmax.f32 %v1466_v29, 0.0 }
 0x29d   : > { %v1985_v21 = vpack.c.bf16 %v1489_v16, %v1488_v15 }
 0x29e   : > { %1995 = vst [vmem:[%s2782_s22 + $0x20] sm:$0xff] %v1975_v19  }
 0x29f   : > { %1997 = vst [vmem:[%s2782_s22 + $0x30] sm:$0xff] %v1985_v21   ;;  %v1445_v27 = vpop.f32.mrf.mxu2 }
 0x2a0   : > { %v1455_v30 = vpop.f32.mrf.mxu3  ;;  %v1427_v31 = vpop.f32.mrf.mxu0  ;;  %v1470_v45 = vadd.f32 %v1445_v27, %v1277_v42 }
 0x2a1   : > { %v1463_v34 = vadd.f32 %v1427_v31, %v1270_v5  ;;  %v1437_v35 = vpop.f32.mrf.mxu1  ;;  %v1474_v49 = vadd.f32 %v1455_v30, %v1281_v43 }
 0x2a2   : > { %v1467_v37 = vadd.f32 %v1437_v35, %v1274_v32  ;;  %v1486_v54 = vmax.f32 %v1470_v45, 0.0 }
 0x2a3   : > { %v1479_v40 = vmax.f32 %v1463_v34, 0.0  ;;  %v1490_v56 = vmax.f32 %v1474_v49, 0.0 }
 0x2a4   : > { %v1483_v11 = vmax.f32 %v1467_v37, 0.0 }
 0x2a5   : > { %v1960_v44 = vpack.c.bf16 %v1479_v40, %v1478_v39 }
 0x2a6   : > { %v1970_v46 = vpack.c.bf16 %v1483_v11, %v1482_v41 }
 0x2a7   : > { %1992 = vst [vmem:[%s2782_s22 + $0x8] sm:$0xff] %v1960_v44   ;;  %v1447_v48 = vpop.f32.mrf.mxu2 }
 0x2a8   : > { %1994 = vst [vmem:[%s2782_s22 + $0x18] sm:$0xff] %v1970_v46   ;;  %v1471_v51 = vadd.f32 %v1447_v48, %v1278_v47  ;;  %v1457_v52 = vpop.f32.mrf.mxu3 }
 0x2a9   : > { %v1475_v53 = vadd.f32 %v1457_v52, %v1282_v50 }
 0x2aa   : > { %v1487_v55 = vmax.f32 %v1471_v51, 0.0 }
 0x2ab   : > { %v1491_v57 = vmax.f32 %v1475_v53, 0.0 }
 0x2ac   : > { %v1980_v58 = vpack.c.bf16 %v1487_v55, %v1486_v54 }
 0x2ad   : > { %v1990_v59 = vpack.c.bf16 %v1491_v57, %v1490_v56 }
 0x2ae   : > { %1996 = vst [vmem:[%s2782_s22 + $0x28] sm:$0xff] %v1980_v58  }
 0x2af   : > { %1998 = vst [vmem:[%s2782_s22 + $0x38] sm:$0xff] %v1990_v59  }
 0x2b0 PF: > { %s3060_s19 = sld [smem:[#allocation26_spill]]  ;;  %s1537_s8 = sshll.u32 %s2782_s22, 4  ;;  %s1538_s8 = int_to_ptr.vmem [resolvable:$true] %s1537_s8 }
 0x2b1   : > { %s3061_s15 = sld [smem:[#allocation39_spill]]  ;;  %s1525_s14 = scalar_lea.sflag [#allocation9], %s402_s5 }
 0x2b6   : > { %s1951_s21 = sshll.u32 %s3060_s19, 6 }
 0x2b7   : > { %s1536_s13 = scalar_lea.hbm %s3061_s15, %s1951_s21  ;;  %s2298_s7 = scalar_lea.hbm %s3061_s15, 128 }
 0x2b8   : > { %s1539_s18 = sshll.u32 %s1536_s13, 4  ;;  %s1540_s18 = int_to_ptr.hbm [resolvable:$true] %s1539_s18 }
 0x2b9   : > { %s2292_s27 = sshra.s32 %s1540_s18, 4  ;;  %s2293_s27 = int_to_ptr.hbm [resolvable:$true] %s2292_s27 }
 0x2ba   : > { %s2294_s26 = scalar_lea.hbm %s2293_s27, 64  ;;  %p2299_p1 = scmp.lt.s32.totalorder %s2293_s27, %s3061_s15 }
 0x2bb   : > { %p2295_p13 = scmp.ne.s32.totalorder %s2293_s27, %s2294_s26  ;;  %p2300_p3 = scmp.lt.s32.totalorder %s2298_s7, %s2294_s26 }
 0x2bd   : > { %p2296_p0 = pnand %p2295_p13, %p2645_p2  ;;  %p2301_p10 = por %p2300_p3, %p2299_p1 }
 0x2bf   : > { %p2297_p11 = pneg %p2296_p0 }
 0x2c1   : > { %p2302_p5 = pnand %p2301_p10, %p2297_p11 }
 0x2c3   : > { %2305 = shalt.err (!%p2302_p5)
}
 0x2c4   : > { %s2442_s5 = smov 64   ;;  %s2443_s22 = smov 4  }
 0x2c5   : > { %2033 = dma.vmem_to_hbm [thread:$0]  (%p2645_p2), %s1538_s8, 1024, %s1540_s18, %s1525_s14, %s2442_s5, %s2442_s5, %s2443_s22  }
 0x2c6 PF: > { %s3062_s24 = sld [smem:[#allocation34_spill]]  ;;  %p2053_p8 = scmp.ge.s32.totalorder %s2430_s10, 2 }
 0x2c7   : > { %s1554_s6 = sand.u32 1, %s2378_s0  }
 0x2c8   : > { %s1555_s12 = scalar_lea.sflag [#allocation9], %s1554_s6 }
 0x2cc   : > { %p3063_p4 = scmp.ne.s32.totalorder %s3062_s24, 0 }
 0x2ce   : > { %p2049_p6 = pnand %p2053_p8, %p3063_p4 }
 0x2d0   : > { %p2050_p9 = pneg %p2049_p6 }
 0x2d2   : > { %2373 = dma.done.wait (%p2050_p9), %s1555_s12, 1024  }
 0x2d3   : > { %2375 = vsyncadd (%p2050_p9), %s1555_s12, 4294966272  ;;  %s46_s10 = sadd.s32 1, %s2430_s10   ;;  %s3065_s9 = sld [smem:[#allocation23_spill]] }
 0x2d4   : > { %p2950_p12 = scmp.ge.s32.totalorder %s46_s10, 6   ;;  %s3066_s21 = sld [smem:[#allocation31_spill]] }
 0x2d5   : > { %s3067_s11 = sld [smem:[#allocation33_spill]]  ;;  %s3074_s0 = smov %s2382_s1 }
 0x2d6   : > { %s3068_s28 = sld [smem:[#allocation24_spill]]  ;;  %s3076_s22 = smov %s2394_s2 }
 0x2d7   : > { %s3069_s26 = sld [smem:[#allocation32_spill]]  ;;  %s3077_s2 = smov %s2398_s23 }
 0x2d8   : > { %s3070_s27 = sld [smem:[#allocation27_spill]]  ;;  %s3079_s24 = smov %s2406_s25 }
 0x2d9   : > { %s3071_s13 = sld [smem:[#allocation28_spill]]  ;;  %s3075_s1 = smov %s3065_s9 }
 0x2da   : > { %s3072_s29 = sld [smem:[#allocation29_spill]] }
 0x2db   : > { %s3073_s30 = sld [smem:[#allocation30_spill]]  ;;  %s3078_s23 = smov %s3067_s11 }
 0x2dc   : > { %s3080_s25 = smov %s3068_s28  ;;  %45 = sbr.rel (!%p2950_p12) target bundleno = 24 (0x18), region = 120 }
 0x2df   : > { %s3081_s28 = smov %s3071_s13 }
 0x2e1   :  { %1561 = vsyncpa [#allocation8], 1 }
 0x2e2   :  { %1563 = vsyncpa [#allocation8 + $0x1], 1 }
 0x2e3   :  { %1564 = vsyncpa [#allocation11], 1 }
 0x2e4   :  { %1566 = vsyncpa [#allocation11 + $0x1], 1 }
 0x2e5   :  { %1567 = vsyncpa [#allocation9], 1 }
 0x2e6   :  { %1569 = vsyncpa [#allocation9 + $0x1], 1 }

</bundles_post_ra>
